<compile_context>
chip_gen: v7x
topology: tpu7x:2x2x1
jax: 0.10.0
libtpu: 0.0.40
codegen_flags: <defaults>
</compile_context>

<pallas_src>
import numpy as np
import jax
import jax.numpy as jnp
from jax.experimental import pallas as pl
from jax.experimental.pallas import tpu as pltpu


_TB = 512  # fixed inner cumsum block; the triangular operator is (_TB, _TB)


def _round_up(x, m):
    return (x + m - 1) // m * m


def _pick_block(n, base, cap):
    """Largest multiple of `base` that divides n and is <= max(cap, base)."""
    cap = max(cap, base)
    t = (min(n, cap) // base) * base
    while t > base:
        if n % t == 0:
            return t
        t -= base
    return base


# ---------------------------------------------------------------------------
# Kernel 1: per-pixel-tile prep.   grid = (B, HWp // T1), ("parallel","arbitrary")
#   inputs : probs [B, Cp, HWp] f32, labels [B, 1, HWp] i32, w [Cp, 1] f32
#   outputs: enc [Cp, P] i32 packed sort key (= -((bitcast(err) << 1) | fg)),
#            present [B, Cp, 1] f32 (per-class fg counts),
#            wnum [B,1,1], wden [B,1,1] (weighted-NLL numerator / denominator).
# ---------------------------------------------------------------------------
def _prep_kernel(probs_ref, labels_ref, w_ref,
                 enc_ref, present_ref, wnum_ref, wden_ref):
    t = pl.program_id(1)

    @pl.when(t == 0)
    def _init():
        present_ref[...] = jnp.zeros_like(present_ref)
        wnum_ref[...] = jnp.zeros_like(wnum_ref)
        wden_ref[...] = jnp.zeros_like(wden_ref)

    probs = probs_ref[...]                          # [Cp, T] probabilities
    labels = labels_ref[...]                        # [1, T] int32 (-1 = pixel pad)
    Cp, T = probs.shape

    cls_idx = jax.lax.broadcasted_iota(jnp.int32, (Cp, T), 0)
    onehot_b = labels == cls_idx                    # [Cp, T] (broadcast over [1,T])
    valid_b = labels != 0                           # [1, T]  Lovasz ignores label 0

    fg_b = jnp.logical_and(onehot_b, valid_b)       # [Cp, T]
    fg = fg_b.astype(jnp.float32)
    # Invalid / padded pixels -> error 0, fg 0 (sort to the zero tail, add 0).
    err = jnp.abs(fg - probs) * valid_b.astype(jnp.float32)

    # Pack (error, fg) into one sortable int32 key:
    #   u   = (bitcast_f32(err) << 1) | fg     (err in [0,1] -> no sign-bit overflow)
    #   enc = -u  so that an ASCENDING sort of enc is a descending sort by error.
    u = jnp.bitwise_or(jnp.left_shift(pltpu.bitcast(err, jnp.int32), 1),
                       fg_b.astype(jnp.int32))
    enc_ref[...] = -u

    present_ref[...] += jnp.sum(fg, axis=1, keepdims=True)

    # Weighted NLL: gather the label-class prob / weight first so log() runs on
    # [1,T] instead of [Cp,T]  (Cp x fewer EUP transcendentals).
    onehot = onehot_b.astype(jnp.float32)
    p_sel = jnp.sum(onehot * probs, axis=0, keepdims=True)        # [1, T]
    w_sel = jnp.sum(onehot * w_ref[...], axis=0, keepdims=True)   # [1, T]
    nll = -jnp.log(jnp.maximum(p_sel, 1e-8))                      # [1, T]
    wnum_ref[...] += jnp.sum(w_sel * nll, axis=1, keepdims=True)
    wden_ref[...] += jnp.sum(w_sel, axis=1, keepdims=True)


# ---------------------------------------------------------------------------
# Kernel 2: streamed Lovasz over the globally sorted pixel axis.
#   grid = (P // T2,), "arbitrary" (carried prefix sum + loss accumulators).
#   Per grid step one [Cp, T2] block is resident; a static inner loop over
#   T2//_TB sub-blocks does an MXU matmul against a VMEM-resident bf16
#   triangular operator (generated in-kernel) plus a [Cp,1] cross-block carry.
# ---------------------------------------------------------------------------
def _lovasz_kernel(enc_ref, gts_ref, wnum_ref, wden_ref, out_ref,
                   tri_ref, cum_ref, carry_ref, loss_ref):
    i = pl.program_id(0)
    nt = pl.num_programs(0)

    @pl.when(i == 0)
    def _init():
        row = jax.lax.broadcasted_iota(jnp.int32, (_TB, _TB), 0)
        col = jax.lax.broadcasted_iota(jnp.int32, (_TB, _TB), 1)
        tri_ref[...] = (row <= col).astype(tri_ref.dtype)     # cumsum operator
        carry_ref[...] = jnp.zeros_like(carry_ref)
        loss_ref[...] = jnp.zeros_like(loss_ref)
        out_ref[...] = jnp.zeros_like(out_ref)

    enc = enc_ref[...]                               # [Cp, T2] packed keys (sorted)
    Cp, T2 = enc.shape

    # Decode the packed key: err = |fg - p| (exact f32 bits), fg in {0,1}.
    u = -enc
    fg = jnp.bitwise_and(u, 1).astype(jnp.float32)
    err = pltpu.bitcast(jnp.right_shift(u, 1), jnp.float32)

    # Streamed inclusive prefix sum of fg along the globally sorted pixel axis.
    tri = tri_ref[...]
    fg_b16 = fg.astype(jnp.bfloat16)                 # exact 0/1, halves MXU feed
    carry = carry_ref[...]                           # [Cp, 1] cross-tile carry
    for b in range(T2 // _TB):                       # static unroll (T2 static)
        lo = b * _TB
        cum_blk = jnp.dot(fg_b16[:, lo:lo + _TB], tri,
                          preferred_element_type=jnp.float32) + carry
        cum_ref[:, lo:lo + _TB] = cum_blk
        carry = cum_blk[:, _TB - 1:_TB]              # last column == running total
    carry_ref[...] = carry

    cumfg = cum_ref[...]                             # global inclusive cumsum
    gts = gts_ref[...]                               # [Cp, 1] total fg per class
    posf = (jax.lax.broadcasted_iota(jnp.int32, (Cp, T2), 1)
            + (i * T2 + 1)).astype(jnp.float32)      # 1-based global position
    inter = gts - cumfg
    union = gts + posf - cumfg                       # >= 1 everywhere
    union_prev = union - 1.0 + fg                    # union at pos-1 (== gts at pos 1)
    # lovasz_grad fused to one divide via the exact identity
    #   jac_i - jac_{i-1} = select(fg_i, union_i, inter_i) / (union_i * union_{i-1}),
    # which also holds at the first position; the denominator is 0 only for the
    # inert gts==0 rows (numerator 0 there too), so clamp to keep it finite.
    num = jnp.where(fg > 0.5, union, inter)
    grad = num / jnp.maximum(union * union_prev, 1.0)
    loss_ref[...] += jnp.sum(err * grad, axis=1, keepdims=True)

    @pl.when(i == nt - 1)
    def _finalize():
        present = (gts_ref[...] > 0.5).astype(jnp.float32)        # [Cp, 1]
        n_present = jnp.sum(present, axis=0, keepdims=True)       # [1, 1]
        loss_sum = jnp.sum(loss_ref[...] * present, axis=0, keepdims=True)
        jacc = jnp.where(n_present > 0.5,
                         loss_sum / jnp.maximum(n_present, 1.0), 0.0)
        wden = wden_ref[...]
        wce = jnp.where(wden > 0.0,
                        wnum_ref[...] / jnp.where(wden > 0.0, wden, 1.0), 0.0)
        out_ref[...] = wce + jacc


def segment_loss(output, label, loss_w, *, pixel_tile=8192, lovasz_tile=8192):
    """output: [B, C, H, W] probabilities (NCHW), label: [B, H, W] int, loss_w: [C]."""
    B, C, H, W = output.shape
    HW = H * W
    Cp = _round_up(C, 8)                           # sublane-align the class axis
    T1 = min(_round_up(pixel_tile, _TB), _round_up(HW, _TB))
    HWp = _round_up(HW, T1)                        # pad up to a full prep tile
    nt1 = HWp // T1
    P = B * HWp

    # NCHW is already [C, H*W]-contiguous per batch: reshape only, no transpose.
    probs = output.reshape(B, C, HW).astype(jnp.float32)
    labels = label.reshape(B, 1, HW).astype(jnp.int32)
    if Cp != C or HWp != HW:
        # Padded classes: zero prob & zero weight -> never present, zero NLL.
        # Padded pixels: label -1 & zero prob -> zero error / fg / NLL.
        probs = jnp.pad(probs, ((0, 0), (0, Cp - C), (0, HWp - HW)))
        labels = jnp.pad(labels, ((0, 0), (0, 0), (0, HWp - HW)),
                         constant_values=-1)
    w = jnp.pad(loss_w.reshape(C, 1).astype(jnp.float32), ((0, Cp - C), (0, 0)))

    enc, present, wnum, wden = pl.pallas_call(
        _prep_kernel,
        grid=(B, nt1),
        out_shape=(
            jax.ShapeDtypeStruct((Cp, P), jnp.int32),
            jax.ShapeDtypeStruct((B, Cp, 1), jnp.float32),
            jax.ShapeDtypeStruct((B, 1, 1), jnp.float32),
            jax.ShapeDtypeStruct((B, 1, 1), jnp.float32),
        ),
        in_specs=[
            pl.BlockSpec((None, Cp, T1), lambda b, t: (b, 0, t)),
            pl.BlockSpec((None, 1, T1), lambda b, t: (b, 0, t)),
            pl.BlockSpec((Cp, 1), lambda b, t: (0, 0)),
        ],
        out_specs=(
            pl.BlockSpec((Cp, T1), lambda b, t: (0, b * nt1 + t)),
            pl.BlockSpec((None, Cp, 1), lambda b, t: (b, 0, 0)),
            pl.BlockSpec((None, 1, 1), lambda b, t: (b, 0, 0)),
            pl.BlockSpec((None, 1, 1), lambda b, t: (b, 0, 0)),
        ),
        compiler_params=pltpu.CompilerParams(
            dimension_semantics=("parallel", "arbitrary"),
            vmem_limit_bytes=48 * 1024 * 1024,
        ),
    )(probs, labels, w)

    # Tiny cross-batch reductions of the per-batch accumulators.
    gts = jnp.sum(present, axis=0)                 # [Cp, 1]
    wnum_t = jnp.sum(wnum, axis=0)                 # [1, 1]
    wden_t = jnp.sum(wden, axis=0)                 # [1, 1]

    # TODO(synk): torch.sort has no in-kernel Pallas equivalent; the global
    # per-class descending sort is done with XLA's sort on the single packed
    # int32 key (ascending sort of the negated key == descending by error).
    enc_sorted = jnp.sort(enc, axis=1, stable=False)

    T2 = _pick_block(P, _TB, lovasz_tile)
    nt2 = P // T2

    out = pl.pallas_call(
        _lovasz_kernel,
        grid=(nt2,),
        out_shape=jax.ShapeDtypeStruct((1, 1), jnp.float32),
        in_specs=[
            pl.BlockSpec((Cp, T2), lambda i: (0, i)),     # sorted packed keys
            pl.BlockSpec((Cp, 1), lambda i: (0, 0)),      # gts / presence
            pl.BlockSpec((1, 1), lambda i: (0, 0)),       # wnum
            pl.BlockSpec((1, 1), lambda i: (0, 0)),       # wden
        ],
        out_specs=pl.BlockSpec((1, 1), lambda i: (0, 0)),
        scratch_shapes=[
            pltpu.VMEM((_TB, _TB), jnp.bfloat16),         # triangular cumsum op
            pltpu.VMEM((Cp, T2), jnp.float32),            # per-tile inclusive cumsum
            pltpu.VMEM((Cp, 1), jnp.float32),             # cross-tile fg carry
            pltpu.VMEM((Cp, 1), jnp.float32),             # per-class loss accum
        ],
        compiler_params=pltpu.CompilerParams(
            dimension_semantics=("arbitrary",),
            vmem_limit_bytes=48 * 1024 * 1024,
        ),
    )(enc_sorted, gts, wnum_t, wden_t)
    return out[0, 0]


def build_loss_weights(config):
    """Deterministic re-implementation of SegmentLoss.__init__ weight setup."""
    nclasses = len(config['learning_map_inv'])
    content = np.zeros(nclasses, dtype=np.float32)
    for cl, freq in config['content'].items():
        content[config['learning_map'][cl]] += freq
    loss_w = 1.0 / (content + 0.001)
    for x_cl in range(nclasses):
        if config['learning_ignore'][x_cl]:
            loss_w[x_cl] = 0.0
    return loss_w.astype(np.float32)


def reference_loss(output, label, loss_w):
    """Pure-numpy faithful re-implementation of the PyTorch forward (float64)."""
    output = output.astype(np.float64)
    loss_w = loss_w.astype(np.float64)
    B, C, H, W = output.shape
    probs = np.transpose(output, (0, 2, 3, 1)).reshape(-1, C)
    labs = label.reshape(-1).astype(np.int64)
    # weighted NLL on log(clamp(p, 1e-8)), reduction='mean' with weights
    logp = np.log(np.clip(probs, 1e-8, None))
    num = -(loss_w[labs] * logp[np.arange(labs.shape[0]), labs]).sum()
    den = loss_w[labs].sum()
    wce = num / den
    # Lovasz softmax, ignore=0, classes='present'
    valid = labs != 0
    vp = probs[valid]
    vl = labs[valid]
    losses = []
    for c in range(C):
        fg = (vl == c).astype(np.float64)
        if fg.sum() == 0:
            continue
        errors = np.abs(fg - vp[:, c])
        perm = np.argsort(-errors, kind='stable')
        e_s = errors[perm]
        fg_s = fg[perm]
        gts = fg_s.sum()
        inter = gts - np.cumsum(fg_s)
        union = gts + np.cumsum(1.0 - fg_s)
        jac = 1.0 - inter / union
        if len(jac) > 1:
            jac[1:] = jac[1:] - jac[:-1]
        losses.append(float(np.dot(e_s, jac)))
    jacc = (sum(losses) / len(losses)) if losses else 0.0
    return wce + jacc


if __name__ == "__main__":
    config = {
        'learning_map_inv': {0: 0, 1: 10, 2: 20, 3: 30},
        'learning_map': {0: 0, 10: 1, 20: 2, 30: 3, 11: 1, 21: 2},
        'content': {0: 0.55, 10: 0.20, 20: 0.12, 30: 0.08, 11: 0.03, 21: 0.02},
        'learning_ignore': {0: True, 1: False, 2: False, 3: False},
    }
    loss_w_np = build_loss_weights(config)

    B, C, H, W = 2, 4, 16, 16
    key = jax.random.PRNGKey(0)
    k1, k2 = jax.random.split(key)
    logits = jax.random.normal(k1, (B, C, H, W), dtype=jnp.float32)
    output = jax.nn.softmax(logits, axis=1)              # probabilities, NCHW
    label = jax.random.randint(k2, (B, H, W), 0, C, dtype=jnp.int32)

    loss = jax.jit(segment_loss)(output, label, jnp.asarray(loss_w_np))
    loss = jax.block_until_ready(loss)

    ref = reference_loss(np.asarray(output), np.asarray(label), loss_w_np)
    np.testing.assert_allclose(float(loss), float(ref), rtol=2e-3, atol=2e-3)
    print("KERNEL_OK")
</pallas_src>

<mosaic_0001>
module attributes {stable_mosaic.version = 11 : i64} {
  func.func @_prep_kernel(%arg0: i32, %arg1: i32, %arg2: memref<1x8x512xf32, #tpu.memory_space<vmem>>, %arg3: memref<1x1x512xi32, #tpu.memory_space<vmem>>, %arg4: memref<8x1xf32, #tpu.memory_space<vmem>>, %arg5: memref<8x512xi32, #tpu.memory_space<vmem>>, %arg6: memref<1x8x1xf32, #tpu.memory_space<vmem>>, %arg7: memref<1x1x1xf32, #tpu.memory_space<vmem>>, %arg8: memref<1x1x1xf32, #tpu.memory_space<vmem>>) attributes {dimension_semantics = [#tpu.dimension_semantics<parallel>, #tpu.dimension_semantics<arbitrary>], iteration_bounds = array<i64: 2, 1>, scalar_prefetch = 0 : i64, scratch_operands = 0 : i64, tpu.core_type = #tpu.core_type<tc>, window_params = [{transform_indices = @transform_0, window_bounds = array<i64: 1, 8, 512>}, {transform_indices = @transform_1, window_bounds = array<i64: 1, 1, 512>}, {pipeline_mode = #tpu.pipeline_mode<synchronous>, transform_indices = @transform_2, window_bounds = array<i64: 8, 1>}, {transform_indices = @transform_3, window_bounds = array<i64: 8, 512>}, {transform_indices = @transform_4, window_bounds = array<i64: 1, 8, 1>}, {transform_indices = @transform_5, window_bounds = array<i64: 1, 1, 1>}, {transform_indices = @transform_6, window_bounds = array<i64: 1, 1, 1>}]} {
    %c0_i32 = arith.constant 0 : i32
    %0 = arith.cmpi eq, %arg1, %c0_i32 : i32
    %1 = arith.extui %0 : i1 to i32
    %c0_i32_0 = arith.constant 0 : i32
    %2 = arith.cmpi ne, %1, %c0_i32_0 : i32
    scf.if %2 {
      %cst_36 = arith.constant 0.000000e+00 : f32
      %70 = vector.broadcast %cst_36 : f32 to vector<8x1xf32>
      %c0_37 = arith.constant 0 : index
      %c0_38 = arith.constant 0 : index
      %c0_39 = arith.constant 0 : index
      %71 = vector.load %arg6[%c0_37, %c0_38, %c0_39] : memref<1x8x1xf32, #tpu.memory_space<vmem>>, vector<1x8x1xf32>
      %72 = vector.shape_cast %71 : vector<1x8x1xf32> to vector<8x1xf32>
      %73 = vector.shape_cast %70 : vector<8x1xf32> to vector<1x8x1xf32>
      tpu.vector_store %arg6[%c0_37, %c0_38, %c0_39], %73 {strides = array<i32>} : memref<1x8x1xf32, #tpu.memory_space<vmem>>, vector<1x8x1xf32>,
      %cst_40 = arith.constant 0.000000e+00 : f32
      %74 = vector.broadcast %cst_40 : f32 to vector<1x1xf32>
      %c0_41 = arith.constant 0 : index
      %c0_42 = arith.constant 0 : index
      %c0_43 = arith.constant 0 : index
      %75 = vector.load %arg7[%c0_41, %c0_42, %c0_43] : memref<1x1x1xf32, #tpu.memory_space<vmem>>, vector<1x1x1xf32>
      %76 = vector.shape_cast %75 : vector<1x1x1xf32> to vector<1x1xf32>
      %77 = vector.shape_cast %74 : vector<1x1xf32> to vector<1x1x1xf32>
      tpu.vector_store %arg7[%c0_41, %c0_42, %c0_43], %77 {strides = array<i32>} : memref<1x1x1xf32, #tpu.memory_space<vmem>>, vector<1x1x1xf32>,
      %cst_44 = arith.constant 0.000000e+00 : f32
      %78 = vector.broadcast %cst_44 : f32 to vector<1x1xf32>
      %c0_45 = arith.constant 0 : index
      %c0_46 = arith.constant 0 : index
      %c0_47 = arith.constant 0 : index
      %79 = vector.load %arg8[%c0_45, %c0_46, %c0_47] : memref<1x1x1xf32, #tpu.memory_space<vmem>>, vector<1x1x1xf32>
      %80 = vector.shape_cast %79 : vector<1x1x1xf32> to vector<1x1xf32>
      %81 = vector.shape_cast %78 : vector<1x1xf32> to vector<1x1x1xf32>
      tpu.vector_store %arg8[%c0_45, %c0_46, %c0_47], %81 {strides = array<i32>} : memref<1x1x1xf32, #tpu.memory_space<vmem>>, vector<1x1x1xf32>,
    } else {
    }
    %c0 = arith.constant 0 : index
    %c0_1 = arith.constant 0 : index
    %c0_2 = arith.constant 0 : index
    %3 = vector.load %arg2[%c0, %c0_1, %c0_2] : memref<1x8x512xf32, #tpu.memory_space<vmem>>, vector<1x8x512xf32>
    %4 = vector.shape_cast %3 : vector<1x8x512xf32> to vector<8x512xf32>
    %c0_3 = arith.constant 0 : index
    %c0_4 = arith.constant 0 : index
    %c0_5 = arith.constant 0 : index
    %5 = vector.load %arg3[%c0_3, %c0_4, %c0_5] : memref<1x1x512xi32, #tpu.memory_space<vmem>>, vector<1x1x512xi32>
    %6 = vector.shape_cast %5 : vector<1x1x512xi32> to vector<1x512xi32>
    %7 = tpu.iota {dimensions = array<i32: 0>} : vector<8x512xi32>
    %8 = vector.broadcast %6 : vector<1x512xi32> to vector<8x512xi32>
    %9 = arith.cmpi eq, %8, %7 : vector<8x512xi32>
    %c0_i32_6 = arith.constant 0 : i32
    %10 = vector.broadcast %c0_i32_6 : i32 to vector<1x512xi32>
    %11 = arith.cmpi ne, %6, %10 : vector<1x512xi32>
    %12 = vector.broadcast %11 : vector<1x512xi1> to vector<8x512xi1>
    %13 = arith.andi %9, %12 : vector<8x512xi1>
    %14 = arith.extui %13 : vector<8x512xi1> to vector<8x512xi32>
    %15 = arith.sitofp %14 : vector<8x512xi32> to vector<8x512xf32>
    %16 = arith.subf %15, %4 : vector<8x512xf32>
    %17 = math.absf %16 : vector<8x512xf32>
    %18 = arith.extui %11 : vector<1x512xi1> to vector<1x512xi32>
    %19 = arith.sitofp %18 : vector<1x512xi32> to vector<1x512xf32>
    %20 = vector.broadcast %19 : vector<1x512xf32> to vector<8x512xf32>
    %21 = arith.mulf %17, %20 : vector<8x512xf32>
    %22 = tpu.bitcast %21 : vector<8x512xf32> -> vector<8x512xi32>
    %c1_i32 = arith.constant 1 : i32
    %23 = vector.broadcast %c1_i32 : i32 to vector<8x512xi32>
    %24 = arith.shli %22, %23 : vector<8x512xi32>
    %25 = arith.extui %13 : vector<8x512xi1> to vector<8x512xi32>
    %26 = arith.ori %24, %25 : vector<8x512xi32>
    %c0_i32_7 = arith.constant 0 : i32
    %27 = vector.broadcast %c0_i32_7 : i32 to vector<8x512xi32>
    %28 = arith.subi %27, %26 : vector<8x512xi32>
    %c0_8 = arith.constant 0 : index
    %c0_9 = arith.constant 0 : index
    %29 = vector.load %arg5[%c0_8, %c0_9] : memref<8x512xi32, #tpu.memory_space<vmem>>, vector<8x512xi32>
    tpu.vector_store %arg5[%c0_8, %c0_9], %28 {strides = array<i32>} : memref<8x512xi32, #tpu.memory_space<vmem>>, vector<8x512xi32>,
    %c0_10 = arith.constant 0 : index
    %c0_11 = arith.constant 0 : index
    %c0_12 = arith.constant 0 : index
    %30 = vector.load %arg6[%c0_10, %c0_11, %c0_12] : memref<1x8x1xf32, #tpu.memory_space<vmem>>, vector<1x8x1xf32>
    %31 = vector.shape_cast %30 : vector<1x8x1xf32> to vector<8x1xf32>
    %cst = arith.constant dense<0.000000e+00> : vector<8xf32>
    %32 = vector.multi_reduction <add>, %15, %cst [1] : vector<8x512xf32> to vector<8xf32>
    %33 = vector.shape_cast %32 : vector<8xf32> to vector<8x1xf32>
    %34 = arith.addf %31, %33 : vector<8x1xf32>
    %c0_13 = arith.constant 0 : index
    %c0_14 = arith.constant 0 : index
    %c0_15 = arith.constant 0 : index
    %35 = vector.load %arg6[%c0_13, %c0_14, %c0_15] : memref<1x8x1xf32, #tpu.memory_space<vmem>>, vector<1x8x1xf32>
    %36 = vector.shape_cast %35 : vector<1x8x1xf32> to vector<8x1xf32>
    %37 = vector.shape_cast %34 : vector<8x1xf32> to vector<1x8x1xf32>
    tpu.vector_store %arg6[%c0_13, %c0_14, %c0_15], %37 {strides = array<i32>} : memref<1x8x1xf32, #tpu.memory_space<vmem>>, vector<1x8x1xf32>,
    %38 = arith.extui %9 : vector<8x512xi1> to vector<8x512xi32>
    %39 = arith.sitofp %38 : vector<8x512xi32> to vector<8x512xf32>
    %40 = arith.mulf %39, %4 : vector<8x512xf32>
    %cst_16 = arith.constant dense<0.000000e+00> : vector<512xf32>
    %41 = vector.multi_reduction <add>, %40, %cst_16 [0] : vector<8x512xf32> to vector<512xf32>
    %42 = vector.shape_cast %41 : vector<512xf32> to vector<1x512xf32>
    %c0_17 = arith.constant 0 : index
    %c0_18 = arith.constant 0 : index
    %43 = vector.load %arg4[%c0_17, %c0_18] : memref<8x1xf32, #tpu.memory_space<vmem>>, vector<8x1xf32>
    %44 = vector.broadcast %43 : vector<8x1xf32> to vector<8x512xf32>
    %45 = arith.mulf %39, %44 : vector<8x512xf32>
    %cst_19 = arith.constant dense<0.000000e+00> : vector<512xf32>
    %46 = vector.multi_reduction <add>, %45, %cst_19 [0] : vector<8x512xf32> to vector<512xf32>
    %47 = vector.shape_cast %46 : vector<512xf32> to vector<1x512xf32>
    %cst_20 = arith.constant 9.99999993E-9 : f32
    %48 = vector.broadcast %cst_20 : f32 to vector<1x512xf32>
    %49 = arith.maximumf %42, %48 : vector<1x512xf32>
    %50 = math.log %49 : vector<1x512xf32>
    %cst_21 = arith.constant 0.000000e+00 : f32
    %51 = vector.broadcast %cst_21 : f32 to vector<1x512xf32>
    %52 = arith.subf %51, %50 : vector<1x512xf32>
    %c0_22 = arith.constant 0 : index
    %c0_23 = arith.constant 0 : index
    %c0_24 = arith.constant 0 : index
    %53 = vector.load %arg7[%c0_22, %c0_23, %c0_24] : memref<1x1x1xf32, #tpu.memory_space<vmem>>, vector<1x1x1xf32>
    %54 = vector.shape_cast %53 : vector<1x1x1xf32> to vector<1x1xf32>
    %55 = arith.mulf %47, %52 : vector<1x512xf32>
    %cst_25 = arith.constant dense<0.000000e+00> : vector<1xf32>
    %56 = vector.multi_reduction <add>, %55, %cst_25 [1] : vector<1x512xf32> to vector<1xf32>
    %57 = vector.shape_cast %56 : vector<1xf32> to vector<1x1xf32>
    %58 = arith.addf %54, %57 : vector<1x1xf32>
    %c0_26 = arith.constant 0 : index
    %c0_27 = arith.constant 0 : index
    %c0_28 = arith.constant 0 : index
    %59 = vector.load %arg7[%c0_26, %c0_27, %c0_28] : memref<1x1x1xf32, #tpu.memory_space<vmem>>, vector<1x1x1xf32>
    %60 = vector.shape_cast %59 : vector<1x1x1xf32> to vector<1x1xf32>
    %61 = vector.shape_cast %58 : vector<1x1xf32> to vector<1x1x1xf32>
    tpu.vector_store %arg7[%c0_26, %c0_27, %c0_28], %61 {strides = array<i32>} : memref<1x1x1xf32, #tpu.memory_space<vmem>>, vector<1x1x1xf32>,
    %c0_29 = arith.constant 0 : index
    %c0_30 = arith.constant 0 : index
    %c0_31 = arith.constant 0 : index
    %62 = vector.load %arg8[%c0_29, %c0_30, %c0_31] : memref<1x1x1xf32, #tpu.memory_space<vmem>>, vector<1x1x1xf32>
    %63 = vector.shape_cast %62 : vector<1x1x1xf32> to vector<1x1xf32>
    %cst_32 = arith.constant dense<0.000000e+00> : vector<1xf32>
    %64 = vector.multi_reduction <add>, %47, %cst_32 [1] : vector<1x512xf32> to vector<1xf32>
    %65 = vector.shape_cast %64 : vector<1xf32> to vector<1x1xf32>
    %66 = arith.addf %63, %65 : vector<1x1xf32>
    %c0_33 = arith.constant 0 : index
    %c0_34 = arith.constant 0 : index
    %c0_35 = arith.constant 0 : index
    %67 = vector.load %arg8[%c0_33, %c0_34, %c0_35] : memref<1x1x1xf32, #tpu.memory_space<vmem>>, vector<1x1x1xf32>
    %68 = vector.shape_cast %67 : vector<1x1x1xf32> to vector<1x1xf32>
    %69 = vector.shape_cast %66 : vector<1x1xf32> to vector<1x1x1xf32>
    tpu.vector_store %arg8[%c0_33, %c0_34, %c0_35], %69 {strides = array<i32>} : memref<1x1x1xf32, #tpu.memory_space<vmem>>, vector<1x1x1xf32>,
    return
  }
  func.func @transform_0(%arg0: i32, %arg1: i32) -> (i32, i32, i32) {
    %c0_i32 = arith.constant 0 : i32
    %c0_i32_0 = arith.constant 0 : i32
    return %arg0, %c0_i32, %arg1 : i32, i32, i32
  }
  func.func @transform_1(%arg0: i32, %arg1: i32) -> (i32, i32, i32) {
    %c0_i32 = arith.constant 0 : i32
    %c0_i32_0 = arith.constant 0 : i32
    return %arg0, %c0_i32, %arg1 : i32, i32, i32
  }
  func.func @transform_2(%arg0: i32, %arg1: i32) -> (i32, i32) {
    %c0_i32 = arith.constant 0 : i32
    %c0_i32_0 = arith.constant 0 : i32
    %c0_i32_1 = arith.constant 0 : i32
    return %c0_i32, %c0_i32_0 : i32, i32
  }
  func.func @transform_3(%arg0: i32, %arg1: i32) -> (i32, i32) {
    %c1_i32 = arith.constant 1 : i32
    %0 = arith.muli %arg0, %c1_i32 : i32
    %1 = arith.addi %0, %arg1 : i32
    %c0_i32 = arith.constant 0 : i32
    %c0_i32_0 = arith.constant 0 : i32
    return %c0_i32, %1 : i32, i32
  }
  func.func @transform_4(%arg0: i32, %arg1: i32) -> (i32, i32, i32) {
    %c0_i32 = arith.constant 0 : i32
    %c0_i32_0 = arith.constant 0 : i32
    %c0_i32_1 = arith.constant 0 : i32
    return %arg0, %c0_i32, %c0_i32_0 : i32, i32, i32
  }
  func.func @transform_5(%arg0: i32, %arg1: i32) -> (i32, i32, i32) {
    %c0_i32 = arith.constant 0 : i32
    %c0_i32_0 = arith.constant 0 : i32
    %c0_i32_1 = arith.constant 0 : i32
    return %arg0, %c0_i32, %c0_i32_0 : i32, i32, i32
  }
  func.func @transform_6(%arg0: i32, %arg1: i32) -> (i32, i32, i32) {
    %c0_i32 = arith.constant 0 : i32
    %c0_i32_0 = arith.constant 0 : i32
    %c0_i32_1 = arith.constant 0 : i32
    return %arg0, %c0_i32, %c0_i32_0 : i32, i32, i32
  }
}

module attributes {stable_mosaic.version = 11 : i64} {
  func.func @_lovasz_kernel(%arg0: i32, %arg1: memref<8x1024xi32, #tpu.memory_space<vmem>>, %arg2: memref<8x1xf32, #tpu.memory_space<vmem>>, %arg3: memref<1x1xf32, #tpu.memory_space<vmem>>, %arg4: memref<1x1xf32, #tpu.memory_space<vmem>>, %arg5: memref<1x1xf32, #tpu.memory_space<vmem>>, %arg6: memref<512x512xbf16, #tpu.memory_space<vmem>>, %arg7: memref<8x1024xf32, #tpu.memory_space<vmem>>, %arg8: memref<8x1xf32, #tpu.memory_space<vmem>>, %arg9: memref<8x1xf32, #tpu.memory_space<vmem>>) attributes {dimension_semantics = [#tpu.dimension_semantics<arbitrary>], iteration_bounds = array<i64: 1>, scalar_prefetch = 0 : i64, scratch_operands = 4 : i64, tpu.core_type = #tpu.core_type<tc>, window_params = [{transform_indices = @transform_0, window_bounds = array<i64: 8, 1024>}, {pipeline_mode = #tpu.pipeline_mode<synchronous>, transform_indices = @transform_1, window_bounds = array<i64: 8, 1>}, {pipeline_mode = #tpu.pipeline_mode<synchronous>, transform_indices = @transform_2, window_bounds = array<i64: 1, 1>}, {pipeline_mode = #tpu.pipeline_mode<synchronous>, transform_indices = @transform_3, window_bounds = array<i64: 1, 1>}, {pipeline_mode = #tpu.pipeline_mode<synchronous>, transform_indices = @transform_4, window_bounds = array<i64: 1, 1>}]} {
    %c0_i32 = arith.constant 0 : i32
    %0 = arith.cmpi eq, %arg0, %c0_i32 : i32
    %1 = arith.extui %0 : i1 to i32
    %c0_i32_0 = arith.constant 0 : i32
    %2 = arith.cmpi ne, %1, %c0_i32_0 : i32
    scf.if %2 {
      %60 = tpu.iota {dimensions = array<i32: 0>} : vector<512x512xi32>
      %61 = tpu.iota {dimensions = array<i32: 1>} : vector<512x512xi32>
      %62 = arith.cmpi sle, %60, %61 : vector<512x512xi32>
      %63 = arith.extui %62 : vector<512x512xi1> to vector<512x512xi32>
      %64 = arith.sitofp %63 : vector<512x512xi32> to vector<512x512xf32>
      %65 = arith.truncf %64 : vector<512x512xf32> to vector<512x512xbf16>
      %c0_29 = arith.constant 0 : index
      %c0_30 = arith.constant 0 : index
      %66 = vector.load %arg6[%c0_29, %c0_30] : memref<512x512xbf16, #tpu.memory_space<vmem>>, vector<512x512xbf16>
      tpu.vector_store %arg6[%c0_29, %c0_30], %65 {strides = array<i32>} : memref<512x512xbf16, #tpu.memory_space<vmem>>, vector<512x512xbf16>,
      %cst_31 = arith.constant 0.000000e+00 : f32
      %67 = vector.broadcast %cst_31 : f32 to vector<8x1xf32>
      %c0_32 = arith.constant 0 : index
      %c0_33 = arith.constant 0 : index
      %68 = vector.load %arg8[%c0_32, %c0_33] : memref<8x1xf32, #tpu.memory_space<vmem>>, vector<8x1xf32>
      tpu.vector_store %arg8[%c0_32, %c0_33], %67 {strides = array<i32>} : memref<8x1xf32, #tpu.memory_space<vmem>>, vector<8x1xf32>,
      %cst_34 = arith.constant 0.000000e+00 : f32
      %69 = vector.broadcast %cst_34 : f32 to vector<8x1xf32>
      %c0_35 = arith.constant 0 : index
      %c0_36 = arith.constant 0 : index
      %70 = vector.load %arg9[%c0_35, %c0_36] : memref<8x1xf32, #tpu.memory_space<vmem>>, vector<8x1xf32>
      tpu.vector_store %arg9[%c0_35, %c0_36], %69 {strides = array<i32>} : memref<8x1xf32, #tpu.memory_space<vmem>>, vector<8x1xf32>,
      %cst_37 = arith.constant 0.000000e+00 : f32
      %71 = vector.broadcast %cst_37 : f32 to vector<1x1xf32>
      %c0_38 = arith.constant 0 : index
      %c0_39 = arith.constant 0 : index
      %72 = vector.load %arg5[%c0_38, %c0_39] : memref<1x1xf32, #tpu.memory_space<vmem>>, vector<1x1xf32>
      tpu.vector_store %arg5[%c0_38, %c0_39], %71 {strides = array<i32>} : memref<1x1xf32, #tpu.memory_space<vmem>>, vector<1x1xf32>,
    } else {
    }
    %c0 = arith.constant 0 : index
    %c0_1 = arith.constant 0 : index
    %3 = vector.load %arg1[%c0, %c0_1] : memref<8x1024xi32, #tpu.memory_space<vmem>>, vector<8x1024xi32>
    %c0_i32_2 = arith.constant 0 : i32
    %4 = vector.broadcast %c0_i32_2 : i32 to vector<8x1024xi32>
    %5 = arith.subi %4, %3 : vector<8x1024xi32>
    %c1_i32 = arith.constant 1 : i32
    %6 = vector.broadcast %c1_i32 : i32 to vector<8x1024xi32>
    %7 = arith.andi %5, %6 : vector<8x1024xi32>
    %8 = arith.sitofp %7 : vector<8x1024xi32> to vector<8x1024xf32>
    %c1_i32_3 = arith.constant 1 : i32
    %9 = vector.broadcast %c1_i32_3 : i32 to vector<8x1024xi32>
    %10 = arith.shrsi %5, %9 : vector<8x1024xi32>
    %11 = tpu.bitcast %10 : vector<8x1024xi32> -> vector<8x1024xf32>
    %c0_4 = arith.constant 0 : index
    %c0_5 = arith.constant 0 : index
    %12 = vector.load %arg6[%c0_4, %c0_5] : memref<512x512xbf16, #tpu.memory_space<vmem>>, vector<512x512xbf16>
    %13 = arith.truncf %8 : vector<8x1024xf32> to vector<8x1024xbf16>
    %c0_6 = arith.constant 0 : index
    %c0_7 = arith.constant 0 : index
    %14 = vector.load %arg8[%c0_6, %c0_7] : memref<8x1xf32, #tpu.memory_space<vmem>>, vector<8x1xf32>
    %15 = vector.extract_strided_slice %13 {offsets = [0, 0], sizes = [8, 512], strides = [1, 1]} : vector<8x1024xbf16> to vector<8x512xbf16>
    %cst = arith.constant dense<0.000000e+00> : vector<8x512xf32>
    %16 = tpu.matmul %15, %12, %cst {dimension_numbers = #tpu.dot_dimension_numbers<[1], [0], [0], [1], [0, 0, 1, 1], [], []>} : vector<8x512xbf16>, vector<512x512xbf16>, vector<8x512xf32> -> vector<8x512xf32>
    %17 = vector.broadcast %14 : vector<8x1xf32> to vector<8x512xf32>
    %18 = arith.addf %16, %17 : vector<8x512xf32>
    %c0_8 = arith.constant 0 : index
    %c0_9 = arith.constant 0 : index
    %19 = vector.load %arg7[%c0_8, %c0_9] : memref<8x1024xf32, #tpu.memory_space<vmem>>, vector<8x512xf32>
    tpu.vector_store %arg7[%c0_8, %c0_9], %18 {strides = array<i32>} : memref<8x1024xf32, #tpu.memory_space<vmem>>, vector<8x512xf32>,
    %20 = vector.extract_strided_slice %18 {offsets = [0, 511], sizes = [8, 1], strides = [1, 1]} : vector<8x512xf32> to vector<8x1xf32>
    %21 = vector.extract_strided_slice %13 {offsets = [0, 512], sizes = [8, 512], strides = [1, 1]} : vector<8x1024xbf16> to vector<8x512xbf16>
    %cst_10 = arith.constant dense<0.000000e+00> : vector<8x512xf32>
    %22 = tpu.matmul %21, %12, %cst_10 {dimension_numbers = #tpu.dot_dimension_numbers<[1], [0], [0], [1], [0, 0, 1, 1], [], []>} : vector<8x512xbf16>, vector<512x512xbf16>, vector<8x512xf32> -> vector<8x512xf32>
    %23 = vector.broadcast %20 : vector<8x1xf32> to vector<8x512xf32>
    %24 = arith.addf %22, %23 : vector<8x512xf32>
    %c0_11 = arith.constant 0 : index
    %c512 = arith.constant 512 : index
    %25 = vector.load %arg7[%c0_11, %c512] : memref<8x1024xf32, #tpu.memory_space<vmem>>, vector<8x512xf32>
    tpu.vector_store %arg7[%c0_11, %c512], %24 {strides = array<i32>} : memref<8x1024xf32, #tpu.memory_space<vmem>>, vector<8x512xf32>,
    %26 = vector.extract_strided_slice %24 {offsets = [0, 511], sizes = [8, 1], strides = [1, 1]} : vector<8x512xf32> to vector<8x1xf32>
    %c0_12 = arith.constant 0 : index
    %c0_13 = arith.constant 0 : index
    %27 = vector.load %arg8[%c0_12, %c0_13] : memref<8x1xf32, #tpu.memory_space<vmem>>, vector<8x1xf32>
    tpu.vector_store %arg8[%c0_12, %c0_13], %26 {strides = array<i32>} : memref<8x1xf32, #tpu.memory_space<vmem>>, vector<8x1xf32>,
    %c0_14 = arith.constant 0 : index
    %c0_15 = arith.constant 0 : index
    %28 = vector.load %arg7[%c0_14, %c0_15] : memref<8x1024xf32, #tpu.memory_space<vmem>>, vector<8x1024xf32>
    %c0_16 = arith.constant 0 : index
    %c0_17 = arith.constant 0 : index
    %29 = vector.load %arg2[%c0_16, %c0_17] : memref<8x1xf32, #tpu.memory_space<vmem>>, vector<8x1xf32>
    %30 = tpu.iota {dimensions = array<i32: 1>} : vector<8x1024xi32>
    %c1024_i32 = arith.constant 1024 : i32
    %31 = arith.muli %arg0, %c1024_i32 : i32
    %c1_i32_18 = arith.constant 1 : i32
    %32 = arith.addi %31, %c1_i32_18 : i32
    %33 = vector.broadcast %32 : i32 to vector<8x1024xi32>
    %34 = arith.addi %30, %33 : vector<8x1024xi32>
    %35 = arith.sitofp %34 : vector<8x1024xi32> to vector<8x1024xf32>
    %36 = vector.broadcast %29 : vector<8x1xf32> to vector<8x1024xf32>
    %37 = arith.subf %36, %28 : vector<8x1024xf32>
    %38 = vector.broadcast %29 : vector<8x1xf32> to vector<8x1024xf32>
    %39 = arith.addf %38, %35 : vector<8x1024xf32>
    %40 = arith.subf %39, %28 : vector<8x1024xf32>
    %cst_19 = arith.constant 1.000000e+00 : f32
    %41 = vector.broadcast %cst_19 : f32 to vector<8x1024xf32>
    %42 = arith.subf %40, %41 : vector<8x1024xf32>
    %43 = arith.addf %42, %8 : vector<8x1024xf32>
    %cst_20 = arith.constant 5.000000e-01 : f32
    %44 = vector.broadcast %cst_20 : f32 to vector<8x1024xf32>
    %45 = arith.cmpf ogt, %8, %44 : vector<8x1024xf32>
    %46 = arith.select %45, %40, %37 : vector<8x1024xi1>, vector<8x1024xf32>
    %47 = arith.mulf %40, %43 : vector<8x1024xf32>
    %cst_21 = arith.constant 1.000000e+00 : f32
    %48 = vector.broadcast %cst_21 : f32 to vector<8x1024xf32>
    %49 = arith.maximumf %47, %48 : vector<8x1024xf32>
    %50 = arith.divf %46, %49 : vector<8x1024xf32>
    %c0_22 = arith.constant 0 : index
    %c0_23 = arith.constant 0 : index
    %51 = vector.load %arg9[%c0_22, %c0_23] : memref<8x1xf32, #tpu.memory_space<vmem>>, vector<8x1xf32>
    %52 = arith.mulf %11, %50 : vector<8x1024xf32>
    %cst_24 = arith.constant dense<0.000000e+00> : vector<8xf32>
    %53 = vector.multi_reduction <add>, %52, %cst_24 [1] : vector<8x1024xf32> to vector<8xf32>
    %54 = vector.shape_cast %53 : vector<8xf32> to vector<8x1xf32>
    %55 = arith.addf %51, %54 : vector<8x1xf32>
    %c0_25 = arith.constant 0 : index
    %c0_26 = arith.constant 0 : index
    %56 = vector.load %arg9[%c0_25, %c0_26] : memref<8x1xf32, #tpu.memory_space<vmem>>, vector<8x1xf32>
    tpu.vector_store %arg9[%c0_25, %c0_26], %55 {strides = array<i32>} : memref<8x1xf32, #tpu.memory_space<vmem>>, vector<8x1xf32>,
    %c0_i32_27 = arith.constant 0 : i32
    %57 = arith.cmpi eq, %arg0, %c0_i32_27 : i32
    %58 = arith.extui %57 : i1 to i32
    %c0_i32_28 = arith.constant 0 : i32
    %59 = arith.cmpi ne, %58, %c0_i32_28 : i32
    scf.if %59 {
      %c0_29 = arith.constant 0 : index
      %c0_30 = arith.constant 0 : index
      %60 = vector.load %arg2[%c0_29, %c0_30] : memref<8x1xf32, #tpu.memory_space<vmem>>, vector<8x1xf32>
      %cst_31 = arith.constant 5.000000e-01 : f32
      %61 = vector.broadcast %cst_31 : f32 to vector<8x1xf32>
      %62 = arith.cmpf ogt, %60, %61 : vector<8x1xf32>
      %63 = arith.extui %62 : vector<8x1xi1> to vector<8x1xi32>
      %64 = arith.sitofp %63 : vector<8x1xi32> to vector<8x1xf32>
      %cst_32 = arith.constant dense<0.000000e+00> : vector<1xf32>
      %65 = vector.multi_reduction <add>, %64, %cst_32 [0] : vector<8x1xf32> to vector<1xf32>
      %66 = vector.shape_cast %65 : vector<1xf32> to vector<1x1xf32>
      %c0_33 = arith.constant 0 : index
      %c0_34 = arith.constant 0 : index
      %67 = vector.load %arg9[%c0_33, %c0_34] : memref<8x1xf32, #tpu.memory_space<vmem>>, vector<8x1xf32>
      %68 = arith.mulf %67, %64 : vector<8x1xf32>
      %cst_35 = arith.constant dense<0.000000e+00> : vector<1xf32>
      %69 = vector.multi_reduction <add>, %68, %cst_35 [0] : vector<8x1xf32> to vector<1xf32>
      %70 = vector.shape_cast %69 : vector<1xf32> to vector<1x1xf32>
      %cst_36 = arith.constant 5.000000e-01 : f32
      %71 = vector.broadcast %cst_36 : f32 to vector<1x1xf32>
      %72 = arith.cmpf ogt, %66, %71 : vector<1x1xf32>
      %cst_37 = arith.constant 1.000000e+00 : f32
      %73 = vector.broadcast %cst_37 : f32 to vector<1x1xf32>
      %74 = arith.maximumf %66, %73 : vector<1x1xf32>
      %75 = arith.divf %70, %74 : vector<1x1xf32>
      %cst_38 = arith.constant 0.000000e+00 : f32
      %76 = vector.broadcast %cst_38 : f32 to vector<1x1xf32>
      %77 = arith.select %72, %75, %76 : vector<1x1xi1>, vector<1x1xf32>
      %c0_39 = arith.constant 0 : index
      %c0_40 = arith.constant 0 : index
      %78 = vector.load %arg4[%c0_39, %c0_40] : memref<1x1xf32, #tpu.memory_space<vmem>>, vector<1x1xf32>
      %cst_41 = arith.constant 0.000000e+00 : f32
      %79 = vector.broadcast %cst_41 : f32 to vector<1x1xf32>
      %80 = arith.cmpf ogt, %78, %79 : vector<1x1xf32>
      %c0_42 = arith.constant 0 : index
      %c0_43 = arith.constant 0 : index
      %81 = vector.load %arg3[%c0_42, %c0_43] : memref<1x1xf32, #tpu.memory_space<vmem>>, vector<1x1xf32>
      %cst_44 = arith.constant 0.000000e+00 : f32
      %82 = vector.broadcast %cst_44 : f32 to vector<1x1xf32>
      %83 = arith.cmpf ogt, %78, %82 : vector<1x1xf32>
      %cst_45 = arith.constant 1.000000e+00 : f32
      %84 = vector.broadcast %cst_45 : f32 to vector<1x1xf32>
      %85 = arith.select %83, %78, %84 : vector<1x1xi1>, vector<1x1xf32>
      %86 = arith.divf %81, %85 : vector<1x1xf32>
      %cst_46 = arith.constant 0.000000e+00 : f32
      %87 = vector.broadcast %cst_46 : f32 to vector<1x1xf32>
      %88 = arith.select %80, %86, %87 : vector<1x1xi1>, vector<1x1xf32>
      %89 = arith.addf %88, %77 : vector<1x1xf32>
      %c0_47 = arith.constant 0 : index
      %c0_48 = arith.constant 0 : index
      %90 = vector.load %arg5[%c0_47, %c0_48] : memref<1x1xf32, #tpu.memory_space<vmem>>, vector<1x1xf32>
      tpu.vector_store %arg5[%c0_47, %c0_48], %89 {strides = array<i32>} : memref<1x1xf32, #tpu.memory_space<vmem>>, vector<1x1xf32>,
    } else {
    }
    return
  }
  func.func @transform_0(%arg0: i32) -> (i32, i32) {
    %c0_i32 = arith.constant 0 : i32
    %c0_i32_0 = arith.constant 0 : i32
    return %c0_i32, %arg0 : i32, i32
  }
  func.func @transform_1(%arg0: i32) -> (i32, i32) {
    %c0_i32 = arith.constant 0 : i32
    %c0_i32_0 = arith.constant 0 : i32
    %c0_i32_1 = arith.constant 0 : i32
    return %c0_i32, %c0_i32_0 : i32, i32
  }
  func.func @transform_2(%arg0: i32) -> (i32, i32) {
    %c0_i32 = arith.constant 0 : i32
    %c0_i32_0 = arith.constant 0 : i32
    %c0_i32_1 = arith.constant 0 : i32
    return %c0_i32, %c0_i32_0 : i32, i32
  }
  func.func @transform_3(%arg0: i32) -> (i32, i32) {
    %c0_i32 = arith.constant 0 : i32
    %c0_i32_0 = arith.constant 0 : i32
    %c0_i32_1 = arith.constant 0 : i32
    return %c0_i32, %c0_i32_0 : i32, i32
  }
  func.func @transform_4(%arg0: i32) -> (i32, i32) {
    %c0_i32 = arith.constant 0 : i32
    %c0_i32_0 = arith.constant 0 : i32
    %c0_i32_1 = arith.constant 0 : i32
    return %c0_i32, %c0_i32_0 : i32, i32
  }
}

</mosaic_0001>

<bundles_post_ra>
// kernel: segment_loss.2
= control target key start
LH: loop header
LB: loop body
LE: loop exit
PB: predicated region body
PF: predicated region fallthrough
CT: control target
= control target key end

     0   :  { %s875_s21 = smov 0   ;;  %s877_s22 = smov 0   ;;  %s1112_s0 = inlined_call_operand.vmem [shape: f32[2,8,512], index: 0, kind: input, shape index: {}]   ;;  %s1113_s1 = inlined_call_operand.vmem [shape: s32[2,1,512], index: 1, kind: input, shape index: {}]   ;;  %s1114_s2 = inlined_call_operand.vmem [shape: f32[8,1], index: 2, kind: input, shape index: {}]   ;;  %s1115_s3 = inlined_call_operand.vmem [shape: s32[8,1024], index: 3, kind: output, shape index: {0}]   ;;  %s1116_s4 = inlined_call_operand.vmem [shape: f32[2,8,1], index: 4, kind: output, shape index: {1}]   ;;  %s1117_s5 = inlined_call_operand.vmem [shape: f32[2,1,1], index: 5, kind: output, shape index: {2}]   ;;  %s1118_s6 = inlined_call_operand.vmem [shape: f32[2,1,1], index: 6, kind: output, shape index: {3}]  }
   0x1   :  { %s879_s23 = smov 0  }
   0x2 LB: > { %s29_s24 = sadd.s32 1, %s832_s22  ;;  %p760_p0 = scmp.ge.s32.totalorder %s836_s23, 1  ;;  %s836_s23 = sphi %s879_s23, %s17_s23   ;;  %s832_s22 = sphi %s877_s22, %s1136_s22   ;;  %s828_s21 = sphi %s875_s21, %s1135_s21  }
   0x3   : > { %p31_p1 = scmp.ge.s32.totalorder %s29_s24, 2  ;;  %p256_p2 = scmp.lt.s32.totalorder %s836_s23, 3 }
   0x5   : > { %s1138_s24 = smov (%p31_p1, %s29_s24), 0  ;;  %p257_p3 = pnand %p760_p0, %p256_p2 }
   0x6   : > { %v515_v0 = vld [vmem:[%s1114_s2] sm:$0xff] (!%p257_p3)  ;;  %p310_p4 = scmp.lt.s32.totalorder (!%p257_p3), %s828_s21, 1  ;;  %v360_v1 = vlaneseq (!%p257_p3)  ;;  %v838_v2 = vmov (!%p257_p3), 0   ;;  %v839_v21 = vmov (!%p257_p3), 0.0   ;;  %s764_s12 = sshll.u32 (!%p257_p3), %s828_s21, 2  ;;  %vm352_vm13 = vcmask (!%p257_p3), 0  }
   0x7   : > { %260 = sbr.rel (%p257_p3) target bundleno = 307 (0x133), region = 32  ;;  %805 = vset.pattern.permute.xlu0 (!%p257_p3), %v838_v2  ;;  %p330_p5 = scmp.lt.s32.totalorder (!%p257_p3), %s764_s12, 7  ;;  %vm350_vm14 = vcmask (!%p257_p3), 7168  }
   0x8   : > { %518 = vperm.xlu0 (!%p257_p3), %805, %v515_v0   ;;  %v361_v3 = vshrl.u32 (!%p257_p3), %v360_v1, 7 }
   0xa   : > { %v905_v4 = vsub.s32 (!%p257_p3), 0, %v361_v3  ;;  %v907_v5 = vsub.s32 (!%p257_p3), 1, %v361_v3  ;;  %v909_v6 = vsub.s32 (!%p257_p3), 2, %v361_v3  ;;  %v911_v7 = vsub.s32 (!%p257_p3), 3, %v361_v3 }
   0xe   : > { %s901_s27 = scalar_select %p310_p4, %s828_s21, 1 }
   0xf   : > { %s1140_s12 = smov (!%p330_p5, %s764_s12), 7 }
  0x10   : > { %s778_s28 = sshll.u32 %s901_s27, 5  ;;  %s763_s29 = sshll.u32 %s901_s27, 2 }
  0x11   : > { %s317_s8 = scalar_lea.vmem %s1112_s0, %s778_s28  ;;  %s326_s11 = scalar_lea.vmem %s1113_s1, %s763_s29 }
  0x12   : > { %v359_v8 = vld [vmem:[%s326_s11] sm:$0xf]  ;;  %v356_v14 = vld [vmem:[%s317_s8 + $0x8] sm:$0xff]  ;;  %v357_v15 = vld [vmem:[%s317_s8 + $0x10] sm:$0xff]  ;;  %s1042_s15 = scalar_lea.vmem %s1117_s5, %s901_s27  ;;  %s765_s16 = sshll.u32 %s1140_s12, 3 }
  0x13   : > { %v355_v9 = vld [vmem:[%s317_s8] sm:$0xff]  ;;  %v365_v10 = vrot.slane %v359_v8, %v905_v4  ;;  %v369_v11 = vrot.slane %v359_v8, %v907_v5  ;;  %v373_v12 = vrot.slane %v359_v8, %v909_v6  ;;  %v377_v13 = vrot.slane %v359_v8, %v911_v7  ;;  %v358_v16 = vld [vmem:[%s317_s8 + $0x18] sm:$0xff]  ;;  %353 = vst.msk [vmem:[%s1042_s15] sm:$0x1] %vm352_vm13, %v839_v21  ;;  %s333_s19 = scalar_lea.vmem %s1115_s3, %s765_s16  ;;  %s766_s20 = sshll.u32 %s901_s27, 3 }
  0x14   : > { %vm382_vm4 = vcmp.ne.s32.totalorder %v359_v8, 0  ;;  %s339_s26 = scalar_lea.vmem %s1116_s4, %s766_s20  ;;  %s345_s30 = scalar_lea.vmem %s1118_s6, %s901_s27 }
  0x15   : > { %vm923_vm0 = vcmp.eq.s32.totalorder %v365_v10, %v361_v3  ;;  %vm927_vm1 = vcmp.eq.s32.totalorder %v369_v11, %v361_v3  ;;  %vm931_vm2 = vcmp.eq.s32.totalorder %v373_v12, %v361_v3  ;;  %vm935_vm3 = vcmp.eq.s32.totalorder %v377_v13, %v361_v3  ;;  %351 = vst.msk [vmem:[%s339_s26] sm:$0xff] %vm350_vm14, %v839_v21 }
  0x16   : > { %v942_v22 = vsel %vm923_vm0, 1.0, %v839_v21  ;;  %v947_v23 = vsel %vm927_vm1, 1.0, %v839_v21  ;;  %v952_v24 = vsel %vm931_vm2, 1.0, %v839_v21  ;;  %v957_v25 = vsel %vm935_vm3, 1.0, %v839_v21  ;;  %354 = vst.msk [vmem:[%s345_s30] sm:$0x1] %vm352_vm13, %v839_v21 }
  0x17   : > { %v960_v26 = vmul.f32 %v942_v22, %v355_v9  ;;  %v963_v27 = vmul.f32 %v947_v23, %v356_v14  ;;  %v966_v28 = vmul.f32 %v952_v24, %v357_v15  ;;  %v969_v29 = vmul.f32 %v957_v25, %v358_v16 }
  0x18   : > { %v383_v30 = vsel %vm382_vm4, 1, %v838_v2  ;;  %v771_v43 = vsel %vm382_vm4, 1.0, %v839_v21 }
  0x19   : > { %v387_v31 = vrot.slane %v383_v30, %v905_v4  ;;  %v391_v32 = vrot.slane %v383_v30, %v907_v5  ;;  %v395_v33 = vrot.slane %v383_v30, %v909_v6  ;;  %v399_v34 = vrot.slane %v383_v30, %v911_v7 }
  0x1a   : > { %v429_v45 = vrot.slane %v771_v43, %v905_v4  ;;  %v433_v46 = vrot.slane %v771_v43, %v907_v5  ;;  %v437_v48 = vrot.slane %v771_v43, %v909_v6  ;;  %v441_v52 = vrot.slane %v771_v43, %v911_v7 }
  0x1b   : > { %vm977_vm5 = vcmp.eq.s32.totalorder %v387_v31, 1  ;;  %vm981_vm6 = vcmp.eq.s32.totalorder %v391_v32, 1  ;;  %vm985_vm7 = vcmp.eq.s32.totalorder %v395_v33, 1  ;;  %vm993_vm9 = vcmp.eq.s32.totalorder %v399_v34, 1 }
  0x1c   : > { %vm404_vm8 = vmand %vm923_vm0, %vm977_vm5  ;;  %v503_v17 = vrot.slane %v966_v28, 4  ;;  %v509_v18 = vrot.slane %v969_v29, 4 }
  0x1d   : > { %vm405_vm10 = vmand %vm927_vm1, %vm981_vm6  ;;  %v767_v39 = vsel %vm404_vm8, 1.0, %v839_v21  ;;  %v408_v0 = vsel %vm404_vm8, 1, %v838_v2 }
  0x1e   : > { %vm406_vm11 = vmand %vm931_vm2, %vm985_vm7  ;;  %v768_v40 = vsel %vm405_vm10, 1.0, %v839_v21  ;;  %v416_v49 = vsub.f32 %v767_v39, %v355_v9  ;;  %v409_v62 = vsel %vm405_vm10, 1, %v838_v2  ;;  %v504_v30 = vadd.f32 %v503_v17, %v966_v28 }
  0x1f   : > { %vm407_vm12 = vmand %vm935_vm3, %vm993_vm9  ;;  %v769_v41 = vsel %vm406_vm11, 1.0, %v839_v21  ;;  %v471_v42 = vadd.f32 %v768_v40, %v767_v39  ;;  %v417_v50 = vsub.f32 %v768_v40, %v356_v14  ;;  %v410_v63 = vsel %vm406_vm11, 1, %v838_v2 }
  0x20   : > { %v770_v44 = vsel %vm407_vm12, 1.0, %v839_v21  ;;  %v418_v51 = vsub.f32 %v769_v41, %v357_v15  ;;  %v420_v55 = vand.u32 2147483647, %v416_v49  ;;  %v411_v3 = vsel %vm407_vm12, 1, %v838_v2 }
  0x21   : > { %v472_v47 = vadd.f32 %v769_v41, %v471_v42  ;;  %v419_v54 = vsub.f32 %v770_v44, %v358_v16  ;;  %v421_v56 = vand.u32 2147483647, %v417_v50  ;;  %v491_v2 = vrot.slane %v960_v26, 4 }
  0x22   : > { %v422_v57 = vand.u32 2147483647, %v418_v51  ;;  %v446_v59 = vmul.f32 %v429_v45, %v420_v55  ;;  %v497_v16 = vrot.slane %v963_v27, 4  ;;  %v510_v31 = vadd.f32 %v509_v18, %v969_v29 }
  0x23   : > { %v473_v53 = vadd.f32 %v770_v44, %v472_v47  ;;  %v423_v58 = vand.u32 2147483647, %v419_v54  ;;  %v447_v60 = vmul.f32 %v433_v46, %v421_v56  ;;  %v492_v19 = vadd.f32 %v491_v2, %v960_v26 }
  0x24   : > { %v448_v61 = vmul.f32 %v437_v48, %v422_v57  ;;  %v454_v4 = vshll.u32 %v446_v59, 1  ;;  %v498_v20 = vadd.f32 %v497_v16, %v963_v27  ;;  %v505_v34 = vrot.slane %v504_v30, 2 }
  0x25   : > { %v449_v1 = vmul.f32 %v441_v52, %v423_v58  ;;  %v455_v5 = vshll.u32 %v447_v60, 1  ;;  %v493_v32 = vrot.slane %v492_v19, 2  ;;  %v511_v35 = vrot.slane %v510_v31, 2 }
  0x26   : > { %v456_v6 = vshll.u32 %v448_v61, 1  ;;  %v458_v8 = vor.u32 %v454_v4, %v408_v0  ;;  %v499_v33 = vrot.slane %v498_v20, 2  ;;  %v506_v38 = vadd.f32 %v505_v34, %v504_v30 }
  0x27   : > { %474 = vadd.xlane.f32.xlu0 %v473_v53  ;;  %v457_v7 = vshll.u32 %v449_v1, 1  ;;  %v459_v9 = vor.u32 %v455_v5, %v409_v62  ;;  %v494_v36 = vadd.f32 %v493_v32, %v492_v19  ;;  %v512_v39 = vadd.f32 %v511_v35, %v510_v31 }
  0x28   : > { %v460_v10 = vor.u32 %v456_v6, %v410_v63  ;;  %v462_v12 = vsub.s32 0, %v458_v8  ;;  %v500_v37 = vadd.f32 %v499_v33, %v498_v20  ;;  %v507_v42 = vrot.slane %v506_v38, 1 }
  0x29   : > { %v461_v11 = vor.u32 %v457_v7, %v411_v3  ;;  %v463_v13 = vsub.s32 0, %v459_v9  ;;  %v495_v40 = vrot.slane %v494_v36, 1  ;;  %v513_v43 = vrot.slane %v512_v39, 1 }
  0x2a   : > { %v464_v14 = vsub.s32 0, %v460_v10  ;;  %466 = vst [vmem:[%s333_s19] sm:$0xff] %v462_v12  ;;  %v501_v41 = vrot.slane %v500_v37, 1  ;;  %v508_v45 = vadd.f32 %v507_v42, %v506_v38 }
  0x2b   : > { %v465_v15 = vsub.s32 0, %v461_v11  ;;  %467 = vst [vmem:[%s333_s19 + $0x8] sm:$0xff] %v463_v13  ;;  %v496_v44 = vadd.f32 %v495_v40, %v494_v36  ;;  %v514_v27 = vadd.f32 %v513_v43, %v512_v39  ;;  %v470_v40 = vld [vmem:[%s339_s26] sm:$0xff] }
  0x2c   : > { %468 = vst [vmem:[%s333_s19 + $0x10] sm:$0xff] %v464_v14  ;;  %v502_v26 = vadd.f32 %v501_v41, %v500_v37  ;;  %v551_v47 = vmax.f32 %v508_v45, 1e-08  ;;  %v565_v43 = vld [vmem:[%s1042_s15] sm:$0x1] }
  0x2d   : > { %469 = vst [vmem:[%s333_s19 + $0x18] sm:$0xff] %v465_v15  ;;  %v549_v46 = vmax.f32 %v496_v44, 1e-08  ;;  %v552_v29 = vmax.f32 %v514_v27, 1e-08 }
  0x2e   : > { %v550_v28 = vmax.f32 %v502_v26, 1e-08  ;;  %v578_v45 = vld [vmem:[%s345_s30] sm:$0x1] }
  0x2f   : > { %806 = vlog2.f32 %v549_v46 }
  0x30   : > { %808 = vlog2.f32 %v550_v28 }
  0x31   : > { %810 = vlog2.f32 %v551_v47 }
  0x32   : > { %812 = vlog2.f32 %v552_v29 }
  0x39   : > { %v807_v48 = vpop.eup %806 }
  0x3a   : > { %v809_v50 = vpop.eup %808  ;;  %v554_v61 = vmul.f32 0.6931472, %v807_v48 }
  0x3b   : > { %v811_v55 = vpop.eup %810  ;;  %v556_v3 = vmul.f32 0.6931472, %v809_v50 }
  0x3c   : > { %v813_v56 = vpop.eup %812  ;;  %v558_v4 = vmul.f32 0.6931472, %v811_v55  ;;  %v561_v10 = vsub.f32 0.0, %v554_v61 }
  0x3d   : > { %v562_v11 = vsub.f32 0.0, %v556_v3 }
  0x3e   : > { %v563_v12 = vsub.f32 0.0, %v558_v4 }
  0x87   : > { %v519_v49 = vpop.permute.xlu0 %518 }
  0x88   : > { %v521_v51 = vmul.f32 %v942_v22, %v519_v49  ;;  %v522_v52 = vmul.f32 %v947_v23, %v519_v49  ;;  %v523_v53 = vmul.f32 %v952_v24, %v519_v49  ;;  %v524_v54 = vmul.f32 %v957_v25, %v519_v49 }
  0x89   : > { %v560_v22 = vmul.f32 0.6931472, %v813_v56 }
  0x8a   : > { %v525_v57 = vrot.slane %v521_v51, 4  ;;  %v531_v58 = vrot.slane %v522_v52, 4  ;;  %v537_v59 = vrot.slane %v523_v53, 4  ;;  %v543_v60 = vrot.slane %v524_v54, 4 }
  0x8b   : > { %v564_v13 = vsub.f32 0.0, %v560_v22 }
  0x8c   : > { %v526_v62 = vadd.f32 %v525_v57, %v521_v51  ;;  %v532_v63 = vadd.f32 %v531_v58, %v522_v52  ;;  %v538_v0 = vadd.f32 %v537_v59, %v523_v53  ;;  %v544_v1 = vadd.f32 %v543_v60, %v524_v54 }
  0x8e   : > { %v527_v5 = vrot.slane %v526_v62, 2  ;;  %v533_v23 = vrot.slane %v532_v63, 2  ;;  %v539_v6 = vrot.slane %v538_v0, 2  ;;  %v545_v24 = vrot.slane %v544_v1, 2 }
  0x90   : > { %v528_v7 = vadd.f32 %v527_v5, %v526_v62  ;;  %v534_v25 = vadd.f32 %v533_v23, %v532_v63  ;;  %v540_v8 = vadd.f32 %v539_v6, %v538_v0  ;;  %v546_v9 = vadd.f32 %v545_v24, %v544_v1 }
  0x92   : > { %v529_v14 = vrot.slane %v528_v7, 1  ;;  %v535_v15 = vrot.slane %v534_v25, 1  ;;  %v541_v2 = vrot.slane %v540_v8, 1  ;;  %v547_v16 = vrot.slane %v546_v9, 1 }
  0x94   : > { %v530_v17 = vadd.f32 %v529_v14, %v528_v7  ;;  %v536_v18 = vadd.f32 %v535_v15, %v534_v25  ;;  %v542_v19 = vadd.f32 %v541_v2, %v540_v8  ;;  %v548_v20 = vadd.f32 %v547_v16, %v546_v9 }
  0x96   : > { %v566_v30 = vmul.f32 %v561_v10, %v530_v17  ;;  %v567_v31 = vmul.f32 %v562_v11, %v536_v18  ;;  %v568_v32 = vmul.f32 %v563_v12, %v542_v19  ;;  %v569_v33 = vmul.f32 %v564_v13, %v548_v20 }
  0x97   : > { %v579_v34 = vadd.f32 %v536_v18, %v530_v17 }
  0x98   : > { %v570_v35 = vadd.f32 %v567_v31, %v566_v30 }
  0x99   : > { %v580_v36 = vadd.f32 %v579_v34, %v542_v19 }
  0x9a   : > { %v571_v37 = vadd.f32 %v570_v35, %v568_v32 }
  0x9b   : > { %v581_v38 = vadd.f32 %v580_v36, %v548_v20 }
  0x9c   : > { %v572_v39 = vadd.f32 %v571_v37, %v569_v33 }
  0x9e   : > { %573 = vadd.xlane.f32.xlu1 %v572_v39 }
  0xa2   : > { %582 = vadd.xlane.f32.xlu1 %v581_v38 }
  0xb4   : > { %v475_v41 = vpop.xlane.xlu0 %474 }
  0xb5   : > { %v476_v42 = vadd.f32 %v475_v41, %v470_v40 }
  0xb7   : > { %478 = vst.msk [vmem:[%s339_s26] sm:$0xff] %vm350_vm14, %v476_v42 }
 0x12b   : > { %v574_v44 = vpop.xlane.xlu1 %573 }
 0x12c   : > { %v575_v26 = vadd.f32 %v574_v44, %v565_v43 }
 0x12e   : > { %577 = vst.msk [vmem:[%s1042_s15] sm:$0x1] %vm352_vm13, %v575_v26 }
 0x12f   : > { %v583_v27 = vpop.xlane.xlu1 %582 }
 0x130   : > { %v584_v46 = vadd.f32 %v583_v27, %v578_v45 }
 0x132   : > { %585 = vst.msk [vmem:[%s345_s30] sm:$0x1] %vm352_vm13, %v584_v46 }
 0x133 PF: > { %s17_s23 = sadd.s32 1, %s836_s23   ;;  %s1135_s21 = smov %s832_s22 }
 0x134   : > { %p14_p6 = scmp.ge.s32.totalorder %s17_s23, 4   ;;  %s1136_s22 = smov %s1138_s24 }
 0x136   :  { %16 = sbr.rel (!%p14_p6) target bundleno = 2 (0x2), region = 105 }

// kernel: segment_loss.3
= control target key start
LH: loop header
LB: loop body
LE: loop exit
PB: predicated region body
PF: predicated region fallthrough
CT: control target
= control target key end

     0   :  { %s2991_s0 = inlined_call_operand.vmem [shape: s32[8,1024], index: 0, kind: input, shape index: {}]   ;;  %s2992_s1 = inlined_call_operand.vmem [shape: f32[8,1], index: 1, kind: input, shape index: {}]   ;;  %s2993_s2 = inlined_call_operand.<no memory space> [shape: f32[1,1], index: 2, kind: input, shape index: {}]   ;;  %s2994_s4 = inlined_call_operand.hbm [shape: f32[1,1], index: 4, kind: output, shape index: {}]   ;;  %s2995_s3 = inlined_call_operand.<no memory space> [shape: f32[1,1], index: 3, kind: input, shape index: {}]  }
   0x1   :  { %v9_v0 = vstv %s2993_s2  ;;  %v11_v1 = vstv %s2995_s3 }
   0x2   :  { %10 = vst [vmem:[#allocation6] sm:$0x1] %v9_v0  ;;  %12 = vst [vmem:[#allocation7] sm:$0x1] %v11_v1 }
   0x3   :  { %v26_v2 = vlaneseq  ;;  %v2179_v3 = vld [vmem:[%s2991_s0 + $0x18] sm:$0xff]  ;;  %v2184_v4 = vld [vmem:[%s2991_s0 + $0x10] sm:$0xff]  ;;  %v2138_v5 = vmov 1.0|1.0   ;;  %v2139_v6 = vmov 0.0|0.0  }
   0x4   :  { %1315 = vmatprep.subr.bf16.mxu0 %v2138_v5  ;;  %1356 = vmatprep.subr.bf16.mxu1 %v2139_v6  ;;  %v1136_v7 = vsub.s32 0, %v2179_v3  ;;  %v1135_v8 = vsub.s32 0, %v2184_v4 }
   0x5   :  { %13 = vsyncpa [#allocation9], 0  ;;  %v2190_v9 = vshrl.u32 %v26_v2, 7  ;;  %v2192_v10 = vand.u32 127, %v26_v2  ;;  %1357 = vmatpush1.bf16.msra.mxu1 %v2139_v6  ;;  %v3031_v40 = vmov 0  ;;  %v3033_v41 = vmov 0 }
   0x6   :  { %v1144_v11 = vand.u32 1, %v1136_v7  ;;  %1438 = vmatprep.subr.bf16.mxu1 %v2138_v5  ;;  %v1143_v12 = vand.u32 1, %v1135_v8  ;;  %v3035_v46 = vmov 0  ;;  %v3037_v47 = vmov 0  ;;  %v2352_v57 = vld [vmem:[%s2991_s0 + $0x8] sm:$0xff]  ;;  %v2865_v21 = vld [vmem:[%s2991_s0 + $0x30] sm:$0xff] }
   0x7   :  { %v28_v13 = vadd.s32 8, %v2190_v9  ;;  %vm96_vm0 = vcmp.le.s32.totalorder %v2190_v9, %v2192_v10  ;;  %v29_v14 = vadd.s32 16, %v2190_v9  ;;  %v30_v15 = vadd.s32 24, %v2190_v9  ;;  %s2144_s8 = smov [#allocation8]  }
   0x8   :  { %v2205_v16 = vcvt.s32.f32 %v1144_v11  ;;  %v2207_v17 = vcvt.s32.f32 %v1143_v12  ;;  %v59_v18 = vadd.s32 256, %v2190_v9  ;;  %v60_v19 = vadd.s32 264, %v2190_v9  ;;  %s1856_s9 = sshll.u32 %s2144_s8, 4  ;;  %s1857_s9 = int_to_ptr.vmem [resolvable:$true] %s1856_s9 }
   0x9   :  { %vm100_vm1 = vcmp.le.s32.totalorder %v28_v13, %v2192_v10  ;;  %vm104_vm2 = vcmp.le.s32.totalorder %v29_v14, %v2192_v10  ;;  %vm108_vm3 = vcmp.le.s32.totalorder %v30_v15, %v2192_v10  ;;  %v2215_v20 = vadd.s32 256, %v2192_v10  ;;  %s2114_s10 = scalar_lea.vmem %s1857_s9, 16  ;;  %s2118_s11 = scalar_lea.vmem %s1857_s9, 32 }
   0xa   :  { %vm2217_vm4 = vmpackc.low %vm100_vm1, %vm96_vm0  ;;  %v1304_v22 = vpack.c.bf16 %v2205_v16, %v2205_v16  ;;  %v2225_v23 = vpack.c.bf16 %v2207_v17, %v2207_v17  ;;  %v31_v24 = vadd.s32 32, %v2190_v9  ;;  %v32_v26 = vadd.s32 40, %v2190_v9  ;;  %p2115_p0 = scmp.ne.s32.totalorder %s1857_s9, %s2114_s10  ;;  %p2119_p1 = scmp.lt.s32.totalorder %s1857_s9, %s1857_s9 }
   0xb   :  { %1938 = vmatpush1.bf16.msk.msra.mxu0 %vm2217_vm4, %v2138_v5  ;;  %vm2231_vm5 = vmpackc.low %vm108_vm3, %vm104_vm2  ;;  %vm226_vm6 = vcmp.le.s32.totalorder %v59_v18, %v2215_v20  ;;  %vm230_vm7 = vcmp.le.s32.totalorder %v60_v19, %v2215_v20  ;;  %v61_v27 = vadd.s32 272, %v2190_v9  ;;  %v62_v29 = vadd.s32 280, %v2190_v9  ;;  %p2120_p2 = scmp.lt.s32.totalorder %s2118_s11, %s2114_s10 }
   0xc   :  { %1317 = vmatprep.subr.bf16.mxu0 %v2138_v5  ;;  %1388 = vmatprep.mubr.bf16.mxu1 %v1304_v22  ;;  %vm2240_vm8 = vmpackc.low %vm230_vm7, %vm226_vm6  ;;  %vm112_vm9 = vcmp.le.s32.totalorder %v31_v24, %v2192_v10  ;;  %v33_v30 = vadd.s32 48, %v2190_v9  ;;  %v34_v31 = vadd.s32 56, %v2190_v9  ;;  %vm116_vm10 = vcmp.le.s32.totalorder %v32_v26, %v2192_v10 }
   0xd   :  { %1389 = vmatmul.mubr.bf16.vlgmr.msra.gmra.mrb[0].mxu1 %v2225_v23  ;;  %vm234_vm11 = vcmp.le.s32.totalorder %v61_v27, %v2215_v20  ;;  %v63_v32 = vadd.s32 288, %v2190_v9  ;;  %v64_v33 = vadd.s32 296, %v2190_v9  ;;  %vm238_vm12 = vcmp.le.s32.totalorder %v62_v29, %v2215_v20  ;;  %vm2268_vm14 = vmpackc.low %vm116_vm10, %vm112_vm9  ;;  %p2121_p3 = por %p2120_p2, %p2119_p1 }
   0xe   :  { %1970 = vmatpush1.bf16.msk.msra.mxu1 %vm2240_vm8, %v2138_v5  ;;  %1470 = vmatprep.mubr.bf16.mxu1 %v1304_v22  ;;  %vm2261_vm13 = vmpackc.low %vm238_vm12, %vm234_vm11  ;;  %v65_v36 = vadd.s32 304, %v2190_v9  ;;  %v66_v37 = vadd.s32 312, %v2190_v9  ;;  %vm120_vm1 = vcmp.le.s32.totalorder %v33_v30, %v2192_v10  ;;  %vm124_vm2 = vcmp.le.s32.totalorder %v34_v31, %v2192_v10 }
   0xf   :  { %1940 = vmatpush1.bf16.msk.msra.mxu0 %vm2231_vm5, %v2138_v5  ;;  %1440 = vmatprep.subr.bf16.mxu1 %v2138_v5  ;;  %vm242_vm15 = vcmp.le.s32.totalorder %v63_v32, %v2215_v20  ;;  %vm246_vm0 = vcmp.le.s32.totalorder %v64_v33, %v2215_v20  ;;  %v35_v38 = vadd.s32 64, %v2190_v9  ;;  %v36_v39 = vadd.s32 72, %v2190_v9  ;;  %vm2292_vm6 = vmpackc.low %vm124_vm2, %vm120_vm1  ;;  %p2122_p4 = pnand %p2121_p3, %p2115_p0 }
  0x10   :  { %1319 = vmatprep.subr.bf16.mxu0 %v2138_v5  ;;  %vm2287_vm3 = vmpackc.low %vm246_vm0, %vm242_vm15  ;;  %v3034_v41 = vsel %vm2292_vm6, 4294967295, %v3033_v41  ;;  %vm250_vm7 = vcmp.le.s32.totalorder %v65_v36, %v2215_v20  ;;  %vm254_vm9 = vcmp.le.s32.totalorder %v66_v37, %v2215_v20  ;;  %v67_v42 = vadd.s32 320, %v2190_v9 }
  0x11   :  { %v3032_v40 = vsel %vm2287_vm3, 4294967295, %v3031_v40  ;;  %v68_v43 = vadd.s32 328, %v2190_v9  ;;  %vm128_vm10 = vcmp.le.s32.totalorder %v35_v38, %v2192_v10  ;;  %vm132_vm11 = vcmp.le.s32.totalorder %v36_v39, %v2192_v10  ;;  %vm2311_vm12 = vmpackc.low %vm254_vm9, %vm250_vm7 }
  0x12   :  { %1972 = vmatpush1.bf16.msk.msra.mxu1 %vm2261_vm13, %v2138_v5  ;;  %v37_v44 = vadd.s32 80, %v2190_v9  ;;  %v38_v45 = vadd.s32 88, %v2190_v9  ;;  %v3036_v46 = vsel %vm2311_vm12, 4294967295, %v3035_v46  ;;  %vm2316_vm15 = vmpackc.low %vm132_vm11, %vm128_vm10  ;;  %vm258_vm0 = vcmp.le.s32.totalorder %v67_v42, %v2215_v20 }
  0x13   :  { %1942 = vmatpush1.bf16.msk.msra.mxu0 %vm2268_vm14, %v2138_v5  ;;  %1442 = vmatprep.subr.bf16.mxu1 %v2138_v5  ;;  %v3038_v47 = vsel %vm2316_vm15, 4294967295, %v3037_v47  ;;  %vm262_vm1 = vcmp.le.s32.totalorder %v68_v43, %v2215_v20  ;;  %v69_v48 = vadd.s32 336, %v2190_v9  ;;  %v70_v49 = vadd.s32 344, %v2190_v9 }
  0x14   :  { %1321 = vmatprep.subr.bf16.mxu0 %v2138_v5  ;;  %vm136_vm2 = vcmp.le.s32.totalorder %v37_v44, %v2192_v10  ;;  %vm140_vm7 = vcmp.le.s32.totalorder %v38_v45, %v2192_v10  ;;  %v39_v50 = vadd.s32 96, %v2190_v9  ;;  %v40_v51 = vadd.s32 104, %v2190_v9  ;;  %vm2335_vm9 = vmpackc.low %vm262_vm1, %vm258_vm0 }
  0x15   :  { %v3039_v52 = vmov 0  ;;  %v41_v53 = vadd.s32 112, %v2190_v9  ;;  %vm2341_vm10 = vmpackc.low %vm140_vm7, %vm136_vm2  ;;  %v3041_v54 = vmov 0  ;;  %vm266_vm11 = vcmp.le.s32.totalorder %v69_v48, %v2215_v20 }
  0x16   :  { %1974 = vmatpush1.bf16.msk.msra.mxu1 %vm2287_vm3, %v2138_v5  ;;  %v3040_v52 = vsel %vm2335_vm9, 4294967295, %v3039_v52  ;;  %v3042_v54 = vsel %vm2341_vm10, 4294967295, %v3041_v54  ;;  %v71_v55 = vadd.s32 352, %v2190_v9  ;;  %v72_v56 = vadd.s32 360, %v2190_v9 }
  0x17   :  { %1944 = vmatpush1.bf16.msk.msra.mxu0 %vm2292_vm6, %v2138_v5  ;;  %1444 = vmatprep.subr.bf16.mxu1 %v2138_v5  ;;  %vm144_vm0 = vcmp.le.s32.totalorder %v39_v50, %v2192_v10  ;;  %vm148_vm1 = vcmp.le.s32.totalorder %v40_v51, %v2192_v10  ;;  %v42_v58 = vadd.s32 120, %v2190_v9  ;;  %v43_v59 = vadd.s32 128, %v2190_v9 }
  0x18   :  { %1323 = vmatprep.subr.bf16.mxu0 %v2138_v5  ;;  %v44_v60 = vadd.s32 136, %v2190_v9  ;;  %v2363_v61 = vadd.s32 128, %v2192_v10  ;;  %v3043_v62 = vmov 0  ;;  %vm152_vm7 = vcmp.le.s32.totalorder %v41_v53, %v2192_v10 }
  0x19   :  { %v1134_v63 = vsub.s32 0, %v2352_v57  ;;  %v3045_v0 = vmov 0  ;;  %v73_v1 = vadd.s32 368, %v2190_v9  ;;  %v74_v2 = vadd.s32 376, %v2190_v9 }
  0x1a   :  { %1976 = vmatpush1.bf16.msk.msra.mxu1 %vm2311_vm12, %v2138_v5  ;;  %vm270_vm12 = vcmp.le.s32.totalorder %v70_v49, %v2215_v20  ;;  %v75_v11 = vadd.s32 384, %v2190_v9  ;;  %v76_v12 = vadd.s32 392, %v2190_v9  ;;  %v2388_v13 = vadd.s32 384, %v2192_v10 }
  0x1b   :  { %1946 = vmatpush1.bf16.msk.msra.mxu0 %vm2316_vm15, %v2138_v5  ;;  %1446 = vmatprep.subr.bf16.mxu1 %v2138_v5  ;;  %vm2369_vm2 = vmpackc.low %vm270_vm12, %vm266_vm11  ;;  %vm274_vm15 = vcmp.le.s32.totalorder %v71_v55, %v2215_v20  ;;  %vm156_vm12 = vcmp.le.s32.totalorder %v42_v58, %v2192_v10  ;;  %vm161_vm11 = vcmp.le.s32.totalorder %v43_v59, %v2363_v61  ;;  %v45_v14 = vadd.s32 144, %v2190_v9 }
  0x1c   :  { %1325 = vmatprep.subr.bf16.mxu0 %v2138_v5  ;;  %v3044_v62 = vsel %vm2369_vm2, 4294967295, %v3043_v62  ;;  %v46_v15 = vadd.s32 152, %v2190_v9  ;;  %v3049_v19 = vmov 0  ;;  %vm282_vm6 = vcmp.le.s32.totalorder %v73_v1, %v2215_v20 }
  0x1d   :  { %v77_v22 = vadd.s32 400, %v2190_v9  ;;  %v3051_v24 = vmov 0  ;;  %v78_v26 = vadd.s32 408, %v2190_v9  ;;  %v1142_v27 = vand.u32 1, %v1134_v63 }
  0x1e   :  { %1978 = vmatpush1.bf16.msk.msra.mxu1 %vm2335_vm9, %v2138_v5  ;;  %vm2376_vm9 = vmpackc.low %vm148_vm1, %vm144_vm0  ;;  %vm165_vm0 = vcmp.le.s32.totalorder %v44_v60, %v2363_v61  ;;  %v47_v29 = vadd.s32 160, %v2190_v9  ;;  %v48_v30 = vadd.s32 168, %v2190_v9  ;;  %v3053_v31 = vmov 0 }
  0x1f   :  { %1948 = vmatpush1.bf16.msk.msra.mxu0 %vm2341_vm10, %v2138_v5  ;;  %1448 = vmatprep.subr.bf16.mxu1 %v2138_v5  ;;  %v3046_v0 = vsel %vm2376_vm9, 4294967295, %v3045_v0  ;;  %vm278_vm10 = vcmp.le.s32.totalorder %v72_v56, %v2215_v20  ;;  %vm2417_vm3 = vmpackc.low %vm165_vm0, %vm161_vm11  ;;  %v2443_v32 = vcvt.s32.f32 %v1142_v27  ;;  %v3055_v33 = vmov 0  ;;  %v2551_v27 = vld [vmem:[%s2992_s1] sm:$0xff] }
  0x20   :  { %1327 = vmatprep.subr.bf16.mxu0 %v2138_v5  ;;  %vm2403_vm1 = vmpackc.low %vm278_vm10, %vm274_vm15  ;;  %v3052_v24 = vsel %vm2417_vm3, 4294967295, %v3051_v24  ;;  %vm291_vm15 = vcmp.le.s32.totalorder %v75_v11, %v2388_v13  ;;  %vm295_vm10 = vcmp.le.s32.totalorder %v76_v12, %v2388_v13  ;;  %v79_v36 = vadd.s32 416, %v2190_v9 }
  0x21   :  { %vm2448_vm0 = vmpackc.low %vm295_vm10, %vm291_vm15  ;;  %v3057_v37 = vmov 0  ;;  %v80_v38 = vadd.s32 424, %v2190_v9  ;;  %v2462_v39 = vpack.c.bf16 %v2443_v32, %v2443_v32  ;;  %vm177_vm15 = vcmp.le.s32.totalorder %v47_v29, %v2363_v61 }
  0x22   :  { %1980 = vmatpush1.bf16.msk.msra.mxu1 %vm2369_vm2, %v2138_v5  ;;  %vm2410_vm2 = vmpackc.low %vm156_vm12, %vm152_vm7  ;;  %vm169_vm7 = vcmp.le.s32.totalorder %v45_v14, %v2363_v61  ;;  %vm173_vm12 = vcmp.le.s32.totalorder %v46_v15, %v2363_v61  ;;  %v3056_v33 = vsel %vm2448_vm0, 4294967295, %v3055_v33  ;;  %vm181_vm10 = vcmp.le.s32.totalorder %v48_v30, %v2363_v61 }
  0x23   :  { %1950 = vmatpush1.bf16.msk.msra.mxu0 %vm2376_vm9, %v2138_v5  ;;  %1450 = vmatprep.subr.bf16.mxu1 %v2138_v5  ;;  %v3050_v19 = vsel %vm2410_vm2, 4294967295, %v3049_v19  ;;  %vm286_vm9 = vcmp.le.s32.totalorder %v74_v2, %v2215_v20  ;;  %v49_v42 = vadd.s32 176, %v2190_v9  ;;  %v50_v43 = vadd.s32 184, %v2190_v9 }
  0x24   :  { %1329 = vmatprep.subr.bf16.mxu0 %v2138_v5  ;;  %vm2439_vm11 = vmpackc.low %vm286_vm9, %vm282_vm6  ;;  %vm299_vm6 = vcmp.le.s32.totalorder %v77_v22, %v2388_v13  ;;  %vm303_vm9 = vcmp.le.s32.totalorder %v78_v26, %v2388_v13  ;;  %v3059_v44 = vmov 0  ;;  %1347 = vmatprep.mubr.bf16.mxu0 %v2462_v39  ;;  %v3018_v45 = vmov 0.0   ;;  %v2546_v26 = vld [vmem:[%s2991_s0] sm:$0xff] }
  0x25   :  { %v3054_v31 = vsel %vm2439_vm11, 4294967295, %v3053_v31  ;;  %v3061_v48 = vmov 0  ;;  %v81_v49 = vadd.s32 432, %v2190_v9  ;;  %v82_v50 = vadd.s32 440, %v2190_v9 }
  0x26   :  { %1982 = vmatpush1.bf16.msk.msra.mxu1 %vm2403_vm1, %v2138_v5  ;;  %v2141_v51 = vmov 0   ;;  %v51_v53 = vadd.s32 192, %v2190_v9  ;;  %v52_v55 = vadd.s32 200, %v2190_v9  ;;  %v3063_v56 = vmov 0 }
  0x27   :  { %1952 = vmatpush1.bf16.msk.msra.mxu0 %vm2410_vm2, %v2138_v5  ;;  %1452 = vmatprep.subr.bf16.mxu1 %v2138_v5  ;;  %vm2453_vm2 = vmpackc.low %vm173_vm12, %vm169_vm7  ;;  %vm3007_vm7 = vcmask 7168   ;;  %v3065_v58 = vmov 0  ;;  %v83_v59 = vadd.s32 448, %v2190_v9  ;;  %v84_v60 = vadd.s32 456, %v2190_v9 }
  0x28   :  { %1954 = vmatprep.subr.msk.bf16.mxu0 %vm2417_vm3, %v2138_v5  ;;  %v3058_v37 = vsel %vm2453_vm2, 4294967295, %v3057_v37  ;;  %vm2478_vm12 = vmpackc.low %vm303_vm9, %vm299_vm6  ;;  %1121 = vst.msk [vmem:[#allocation4] sm:$0xff] %vm3007_vm7, %v3018_v45  ;;  %vm311_vm6 = vcmp.le.s32.totalorder %v80_v38, %v2388_v13  ;;  %2092 = vset.pattern.permute.xlu0 %v2141_v51  ;;  %vm185_vm9 = vcmp.le.s32.totalorder %v49_v42, %v2363_v61  ;;  %v53_v1 = vadd.s32 208, %v2190_v9 }
  0x29   :  { %v3060_v44 = vsel %vm2478_vm12, 4294967295, %v3059_v44  ;;  %1122 = vst.msk [vmem:[#allocation5] sm:$0xff] %vm3007_vm7, %v3018_v45  ;;  %vm189_vm7 = vcmp.le.s32.totalorder %v50_v43, %v2363_v61  ;;  %vm319_vm3 = vcmp.le.s32.totalorder %v82_v50, %v2388_v13  ;;  %v54_v2 = vadd.s32 216, %v2190_v9 }
  0x2a   :  { %1984 = vmatpush1.bf16.msk.msra.mxu1 %vm2439_vm11, %v2138_v5  ;;  %vm2487_vm11 = vmpackc.low %vm181_vm10, %vm177_vm15  ;;  %v3067_v12 = vmov 0  ;;  %v3069_v14 = vmov 0  ;;  %v85_v15 = vadd.s32 464, %v2190_v9  ;;  %v86_v22 = vadd.s32 472, %v2190_v9 }
  0x2b   :  { %1332 = vmatpush1.bf16.msra.mxu0 %v2139_v6  ;;  %1986 = vmatprep.subr.msk.bf16.mxu1 %vm2448_vm0, %v2138_v5  ;;  %v3062_v48 = vsel %vm2487_vm11, 4294967295, %v3061_v48  ;;  %vm307_vm0 = vcmp.le.s32.totalorder %v79_v36, %v2388_v13  ;;  %vm2511_vm10 = vmpackc.low %vm189_vm7, %vm185_vm9  ;;  %vm323_vm9 = vcmp.le.s32.totalorder %v83_v59, %v2388_v13  ;;  %v55_v29 = vadd.s32 224, %v2190_v9 }
  0x2c   :  { %1956 = vmatprep.subr.msk.bf16.mxu0 %vm2453_vm2, %v2138_v5  ;;  %vm2507_vm15 = vmpackc.low %vm311_vm6, %vm307_vm0  ;;  %v3066_v58 = vsel %vm2511_vm10, 4294967295, %v3065_v58  ;;  %vm315_vm2 = vcmp.le.s32.totalorder %v81_v49, %v2388_v13  ;;  %vm197_vm0 = vcmp.le.s32.totalorder %v52_v55, %v2363_v61  ;;  %v56_v30 = vadd.s32 232, %v2190_v9 }
  0x2d   :  { %v3064_v56 = vsel %vm2507_vm15, 4294967295, %v3063_v56  ;;  %vm2531_vm7 = vmpackc.low %vm319_vm3, %vm315_vm2  ;;  %vm201_vm3 = vcmp.le.s32.totalorder %v53_v1, %v2363_v61  ;;  %vm205_vm2 = vcmp.le.s32.totalorder %v54_v2, %v2363_v61  ;;  %v3071_v36 = vmov 0 }
  0x2e   :  { %1455 = vmatpush1.bf16.msra.mxu1 %v2139_v6  ;;  %v3068_v12 = vsel %vm2531_vm7, 4294967295, %v3067_v12  ;;  %v1133_v38 = vsub.s32 0, %v2546_v26  ;;  %v3073_v42 = vmov 0  ;;  %v87_v43 = vadd.s32 480, %v2190_v9 }
  0x2f   :  { %1334 = vmatpush1.bf16.msra.mxu0 %v2139_v6  ;;  %1988 = vmatprep.subr.msk.bf16.mxu1 %vm2478_vm12, %v2138_v5  ;;  %v1309_v11 = vld [vmem:[#allocation4] sm:$0xff]  ;;  %vm327_vm12 = vcmp.le.s32.totalorder %v84_v60, %v2388_v13  ;;  %v88_v49 = vadd.s32 488, %v2190_v9  ;;  %v57_v50 = vadd.s32 240, %v2190_v9  ;;  %v58_v51 = vadd.s32 248, %v2190_v9 }
  0x30   :  { %1958 = vmatprep.subr.msk.bf16.mxu0 %vm2487_vm11, %v2138_v5  ;;  %vm193_vm11 = vcmp.le.s32.totalorder %v51_v53, %v2363_v61  ;;  %1312 = vperm.xlu0 %2092, %v1309_v11   ;;  %v2591_v53 = vld [vmem:[%s2991_s0 + $0x28] sm:$0xff]  ;;  %v89_v60 = vadd.s32 496, %v2190_v9  ;;  %v90_v1 = vadd.s32 504, %v2190_v9  ;;  %v1141_v2 = vand.u32 1, %v1133_v38 }
  0x31   :  { %vm2535_vm6 = vmpackc.low %vm197_vm0, %vm193_vm11  ;;  %v1138_v11 = vsub.s32 0, %v2591_v53  ;;  %v1139_v25 = vsub.s32 0, %v2865_v21  ;;  %v1676_v3 = vadd.s32 512, %v2192_v10 }
  0x32   :  { %1457 = vmatpush1.bf16.msra.mxu1 %v2139_v6  ;;  %v3070_v14 = vsel %vm2535_vm6, 4294967295, %v3069_v14  ;;  %vm2565_vm11 = vmpackc.low %vm327_vm12, %vm323_vm9  ;;  %vm209_vm12 = vcmp.le.s32.totalorder %v55_v29, %v2363_v61  ;;  %vm213_vm9 = vcmp.le.s32.totalorder %v56_v30, %v2363_v61 }
  0x33   :  { %1336 = vmatpush1.bf16.msra.mxu0 %v2139_v6  ;;  %1990 = vmatprep.subr.msk.bf16.mxu1 %vm2507_vm15, %v2138_v5  ;;  %v3072_v36 = vsel %vm2565_vm11, 4294967295, %v3071_v36  ;;  %vm2571_vm0 = vmpackc.low %vm205_vm2, %vm201_vm3  ;;  %vm351_vm15 = vcmp.le.s32.totalorder %v90_v1, %v2388_v13  ;;  %v1146_v29 = vand.u32 1, %v1138_v11  ;;  %v1147_v28 = vand.u32 1, %v1139_v25 }
  0x34   :  { %1960 = vmatprep.subr.msk.bf16.mxu0 %vm2511_vm10, %v2138_v5  ;;  %1701 = vperm.xlu0 %2092, %v2551_v27   ;;  %v3074_v42 = vsel %vm2571_vm0, 4294967295, %v3073_v42  ;;  %vm331_vm10 = vcmp.le.s32.totalorder %v85_v15, %v2388_v13  ;;  %vm2600_vm2 = vmpackc.low %vm213_vm9, %vm209_vm12  ;;  %vm347_vm9 = vcmp.le.s32.totalorder %v89_v60, %v2388_v13 }
  0x35   :  { %v2893_v34 = vcvt.s32.f32 %v1147_v28 }
  0x36   :  { %1459 = vmatpush1.bf16.msra.mxu1 %v2139_v6 }
  0x37   :  { %1338 = vmatpush1.bf16.msra.mxu0 %v2139_v6  ;;  %1992 = vmatprep.subr.msk.bf16.mxu1 %vm2531_vm7, %v2138_v5  ;;  %vm335_vm7 = vcmp.le.s32.totalorder %v86_v22, %v2388_v13  ;;  %v2632_v22 = vcvt.s32.f32 %v1141_v2  ;;  %v1307_v35 = vpack.c.bf16 %v2893_v34, %v2893_v34 }
  0x38   :  { %1962 = vmatprep.subr.msk.bf16.mxu0 %vm2535_vm6, %v2138_v5  ;;  %vm2596_vm3 = vmpackc.low %vm335_vm7, %vm331_vm10  ;;  %vm339_vm6 = vcmp.le.s32.totalorder %v87_v43, %v2388_v13  ;;  %vm221_vm10 = vcmp.le.s32.totalorder %v58_v51, %v2363_v61 }
  0x39   :  { %v2649_v43 = vpack.c.bf16 %v2632_v22, %v2632_v22 }
  0x3a   :  { %1461 = vmatpush1.bf16.msra.mxu1 %v2139_v6 }
  0x3b   :  { %1340 = vmatpush1.bf16.msra.mxu0 %v2139_v6  ;;  %1994 = vmatprep.subr.msk.bf16.mxu1 %vm2565_vm11, %v2138_v5  ;;  %vm343_vm11 = vcmp.le.s32.totalorder %v88_v49, %v2388_v13  ;;  %v2652_v49 = vcvt.s32.f32 %v1146_v29 }
  0x3c   :  { %1964 = vmatprep.subr.msk.bf16.mxu0 %vm2571_vm0, %v2138_v5  ;;  %vm217_vm0 = vcmp.le.s32.totalorder %v57_v50, %v2363_v61  ;;  %vm2621_vm7 = vmpackc.low %vm343_vm11, %vm339_vm6  ;;  %vm3091_vm11 = vnez %v3044_v62  ;;  %v1684_v62 = vadd.s32 1, %v2363_v61 }
  0x3d   :  { %vm2625_vm12 = vmpackc.low %vm221_vm10, %vm217_vm0  ;;  %v2663_v50 = vpack.c.bf16 %v2652_v49, %v2652_v49  ;;  %vm3092_vm0 = vnez %v3046_v0  ;;  %vm3093_vm10 = vnez %v3050_v19 }
  0x3e   :  { %1463 = vmatpush1.bf16.msra.mxu1 %v2139_v6  ;;  %vm2643_vm6 = vmpackc.low %vm351_vm15, %vm347_vm9  ;;  %vm3090_vm15 = vnez %v3042_v54  ;;  %vm3094_vm9 = vnez %v3052_v24  ;;  %v1683_v54 = vadd.s32 1, %v2192_v10  ;;  %v1692_v19 = vcvt.s32.f32 %v1684_v62 }
  0x3f   :  { %1342 = vmatpush1.bf16.msra.mxu0 %v2139_v6  ;;  %1996 = vmatprep.subr.msk.bf16.mxu1 %vm2596_vm3, %v2138_v5 }
  0x40   :  { %1966 = vmatprep.subr.msk.bf16.mxu0 %vm2600_vm2, %v2138_v5  ;;  %v1691_v0 = vcvt.s32.f32 %v1683_v54 }
  0x42   :  { %1465 = vmatpush1.bf16.msra.mxu1 %v2139_v6 }
  0x43   :  { %1344 = vmatpush1.bf16.msra.mxu0 %v2139_v6  ;;  %1998 = vmatprep.subr.msk.bf16.mxu1 %vm2621_vm7, %v2138_v5 }
  0x44   :  { %1968 = vmatprep.subr.msk.bf16.mxu0 %vm2625_vm12, %v2138_v5 }
  0x46   :  { %1467 = vmatpush1.bf16.msra.mxu1 %v2139_v6 }
  0x47   :  { %1346 = vmatpush1.bf16.msra.mxu0 %v2139_v6  ;;  %2000 = vmatprep.subr.msk.bf16.mxu1 %vm2643_vm6, %v2138_v5 }
  0x48   :  { %1397 = vmatprep.subr.bf16.mxu0 %v2138_v5 }
  0x4a   :  { %1348 = vmatmul.mubr.bf16.vlgmr.msra.gmra.mrb[0].mxu0 %v2649_v43  ;;  %1469 = vmatpush1.bf16.msra.mxu1 %v2139_v6 }
  0x4b   :  { %1398 = vmatpush1.bf16.msra.mxu0 %v2138_v5  ;;  %1570 = vmatprep.subr.bf16.mxu1 %v2138_v5 }
  0x4c   :  { %1399 = vmatprep.subr.bf16.mxu0 %v2138_v5  ;;  %1429 = vmatprep.mubr.bf16.mxu0 %v2462_v39  ;;  %v2726_v39 = vld [vmem:[%s2991_s0 + $0x38] sm:$0xff] }
  0x4d   :  { %1471 = vmatmul.mubr.bf16.vlgmr.msra.gmra.mrb[4].mxu1 %v2225_v23  ;;  %v2719_v23 = vld [vmem:[%s2991_s0 + $0x20] sm:$0xff]  ;;  %v3020_v60 = vsub.s32 0, %v2726_v39  ;;  %s2143_s0 = smov 1  }
  0x4e   :  { %1571 = vmatpush1.bf16.msra.mxu1 %v2138_v5  ;;  %1602 = vmatprep.mubr.bf16.mxu1 %v2663_v50  ;;  %v1137_v51 = vsub.s32 0, %v2719_v23  ;;  %v1163_v23 = vshra.s32 %v1139_v25, 1 }
  0x4f   :  { %1400 = vmatpush1.bf16.msra.mxu0 %v2138_v5  ;;  %1572 = vmatprep.subr.bf16.mxu1 %v2138_v5  ;;  %v1148_v2 = vand.u32 1, %v3020_v60 }
  0x50   :  { %1401 = vmatprep.subr.bf16.mxu0 %v2138_v5  ;;  %v1145_v1 = vand.u32 1, %v1137_v51 }
  0x51   :  { %v2746_v45 = vcvt.s32.f32 %v1148_v2 }
  0x52   :  { %1573 = vmatpush1.bf16.msra.mxu1 %v2138_v5  ;;  %v2743_v29 = vcvt.s32.f32 %v1145_v1 }
  0x53   :  { %1402 = vmatpush1.bf16.msra.mxu0 %v2138_v5  ;;  %1574 = vmatprep.subr.bf16.mxu1 %v2138_v5  ;;  %v2759_v1 = vpack.c.bf16 %v2746_v45, %v2746_v45 }
  0x54   :  { %1403 = vmatprep.subr.bf16.mxu0 %v2138_v5  ;;  %v2753_v60 = vpack.c.bf16 %v2743_v29, %v2743_v29 }
  0x56   :  { %1575 = vmatpush1.bf16.msra.mxu1 %v2138_v5 }
  0x57   :  { %1404 = vmatpush1.bf16.msra.mxu0 %v2138_v5  ;;  %1576 = vmatprep.subr.bf16.mxu1 %v2138_v5 }
  0x58   :  { %1405 = vmatprep.subr.bf16.mxu0 %v2138_v5 }
  0x5a   :  { %1577 = vmatpush1.bf16.msra.mxu1 %v2138_v5 }
  0x5b   :  { %1406 = vmatpush1.bf16.msra.mxu0 %v2138_v5  ;;  %1578 = vmatprep.subr.bf16.mxu1 %v2138_v5 }
  0x5c   :  { %1407 = vmatprep.subr.bf16.mxu0 %v2138_v5 }
  0x5e   :  { %1579 = vmatpush1.bf16.msra.mxu1 %v2138_v5 }
  0x5f   :  { %1408 = vmatpush1.bf16.msra.mxu0 %v2138_v5  ;;  %1580 = vmatprep.subr.bf16.mxu1 %v2138_v5 }
  0x60   :  { %1409 = vmatprep.subr.bf16.mxu0 %v2138_v5 }
  0x62   :  { %1581 = vmatpush1.bf16.msra.mxu1 %v2138_v5 }
  0x63   :  { %1410 = vmatpush1.bf16.msra.mxu0 %v2138_v5  ;;  %1582 = vmatprep.subr.bf16.mxu1 %v2138_v5 }
  0x64   :  { %1411 = vmatprep.subr.bf16.mxu0 %v2138_v5 }
  0x66   :  { %1583 = vmatpush1.bf16.msra.mxu1 %v2138_v5 }
  0x67   :  { %1412 = vmatpush1.bf16.msra.mxu0 %v2138_v5  ;;  %1584 = vmatprep.subr.bf16.mxu1 %v2138_v5 }
  0x68   :  { %1413 = vmatprep.subr.bf16.mxu0 %v2138_v5 }
  0x6a   :  { %1585 = vmatpush1.bf16.msra.mxu1 %v2138_v5 }
  0x6b   :  { %1414 = vmatpush1.bf16.msra.mxu0 %v2138_v5  ;;  %1586 = vmatprep.subr.bf16.mxu1 %v2138_v5 }
  0x6c   :  { %1415 = vmatprep.subr.bf16.mxu0 %v2138_v5 }
  0x6e   :  { %1587 = vmatpush1.bf16.msra.mxu1 %v2138_v5 }
  0x6f   :  { %1416 = vmatpush1.bf16.msra.mxu0 %v2138_v5  ;;  %1588 = vmatprep.subr.bf16.mxu1 %v2138_v5 }
  0x70   :  { %1417 = vmatprep.subr.bf16.mxu0 %v2138_v5 }
  0x72   :  { %1589 = vmatpush1.bf16.msra.mxu1 %v2138_v5 }
  0x73   :  { %1418 = vmatpush1.bf16.msra.mxu0 %v2138_v5  ;;  %1590 = vmatprep.subr.bf16.mxu1 %v2138_v5 }
  0x74   :  { %1419 = vmatprep.subr.bf16.mxu0 %v2138_v5 }
  0x76   :  { %1591 = vmatpush1.bf16.msra.mxu1 %v2138_v5 }
  0x77   :  { %1420 = vmatpush1.bf16.msra.mxu0 %v2138_v5  ;;  %1592 = vmatprep.subr.bf16.mxu1 %v2138_v5 }
  0x78   :  { %1421 = vmatprep.subr.bf16.mxu0 %v2138_v5 }
  0x7a   :  { %1593 = vmatpush1.bf16.msra.mxu1 %v2138_v5 }
  0x7b   :  { %1422 = vmatpush1.bf16.msra.mxu0 %v2138_v5  ;;  %1594 = vmatprep.subr.bf16.mxu1 %v2138_v5 }
  0x7c   :  { %1423 = vmatprep.subr.bf16.mxu0 %v2138_v5 }
  0x7e   :  { %1595 = vmatpush1.bf16.msra.mxu1 %v2138_v5 }
  0x7f   :  { %1424 = vmatpush1.bf16.msra.mxu0 %v2138_v5  ;;  %1596 = vmatprep.subr.bf16.mxu1 %v2138_v5 }
  0x80   :  { %1425 = vmatprep.subr.bf16.mxu0 %v2138_v5 }
  0x82   :  { %1597 = vmatpush1.bf16.msra.mxu1 %v2138_v5 }
  0x83   :  { %1426 = vmatpush1.bf16.msra.mxu0 %v2138_v5  ;;  %1598 = vmatprep.subr.bf16.mxu1 %v2138_v5 }
  0x84   :  { %1427 = vmatprep.subr.bf16.mxu0 %v2138_v5 }
  0x86   :  { %1599 = vmatpush1.bf16.msra.mxu1 %v2138_v5 }
  0x87   :  { %1428 = vmatpush1.bf16.msra.mxu0 %v2138_v5  ;;  %1600 = vmatprep.subr.bf16.mxu1 %v2138_v5 }
  0x88   :  { %1488 = vmatprep.subr.bf16.mxu0 %v2138_v5 }
  0x8a   :  { %1430 = vmatmul.mubr.bf16.vlgmr.msra.gmra.mrb[4].mxu0 %v2649_v43  ;;  %1601 = vmatpush1.bf16.msra.mxu1 %v2138_v5 }
  0x8b   :  { %1611 = vmatprep.subr.bf16.mxu1 %v2138_v5  ;;  %2002 = vmatpush1.bf16.msk.msra.mxu0 %vm2217_vm4, %v2138_v5  ;;  %vm3085_vm4 = vnez %v3032_v40 }
  0x8c   :  { %1490 = vmatprep.subr.bf16.mxu0 %v2138_v5  ;;  %1520 = vmatprep.mubr.bf16.mxu0 %v2663_v50 }
  0x8d   :  { %1603 = vmatmul.mubr.bf16.vlgmr.msra.gmra.mrb[8].mxu1 %v2753_v60 }
  0x8e   :  { %2034 = vmatpush1.bf16.msk.msra.mxu1 %vm2240_vm8, %v2138_v5  ;;  %1643 = vmatprep.mubr.bf16.mxu1 %v2759_v1  ;;  %vm3087_vm8 = vnez %v3036_v46  ;;  %v2142_v46 = vmov 127  }
  0x8f   :  { %1613 = vmatprep.subr.bf16.mxu1 %v2138_v5  ;;  %2004 = vmatpush1.bf16.msk.msra.mxu0 %vm2231_vm5, %v2138_v5  ;;  %vm3086_vm5 = vnez %v3034_v41 }
  0x90   :  { %1492 = vmatprep.subr.bf16.mxu0 %v2138_v5  ;;  %2093 = vset.pattern.permute.xlu1 %v2142_v46 }
  0x92   :  { %2036 = vmatpush1.bf16.msk.msra.mxu1 %vm2261_vm13, %v2138_v5  ;;  %vm3088_vm13 = vnez %v3038_v47 }
  0x93   :  { %1615 = vmatprep.subr.bf16.mxu1 %v2138_v5  ;;  %2006 = vmatpush1.bf16.msk.msra.mxu0 %vm2268_vm14, %v2138_v5  ;;  %vm3089_vm14 = vnez %v3040_v52 }
  0x94   :  { %1494 = vmatprep.subr.bf16.mxu0 %v2138_v5 }
  0x96   :  { %2038 = vmatpush1.bf16.msk.msra.mxu1 %vm3085_vm4, %v2138_v5  ;;  %vm3095_vm4 = vnez %v3054_v31 }
  0x97   :  { %1617 = vmatprep.subr.bf16.mxu1 %v2138_v5  ;;  %2008 = vmatpush1.bf16.msk.msra.mxu0 %vm3086_vm5, %v2138_v5  ;;  %vm3096_vm5 = vnez %v3056_v33 }
  0x98   :  { %1496 = vmatprep.subr.bf16.mxu0 %v2138_v5 }
  0x9a   :  { %2040 = vmatpush1.bf16.msk.msra.mxu1 %vm3087_vm8, %v2138_v5  ;;  %vm3098_vm8 = vnez %v3060_v44 }
  0x9b   :  { %1619 = vmatprep.subr.bf16.mxu1 %v2138_v5  ;;  %2010 = vmatpush1.bf16.msk.msra.mxu0 %vm3088_vm13, %v2138_v5  ;;  %vm3099_vm13 = vnez %v3062_v48 }
  0x9c   :  { %1498 = vmatprep.subr.bf16.mxu0 %v2138_v5 }
  0x9e   :  { %2042 = vmatpush1.bf16.msk.msra.mxu1 %vm3089_vm14, %v2138_v5  ;;  %vm3100_vm14 = vnez %v3064_v56 }
  0x9f   :  { %1621 = vmatprep.subr.bf16.mxu1 %v2138_v5  ;;  %2012 = vmatpush1.bf16.msk.msra.mxu0 %vm3090_vm15, %v2138_v5  ;;  %vm3101_vm15 = vnez %v3066_v58 }
  0xa0   :  { %1500 = vmatprep.subr.bf16.mxu0 %v2138_v5 }
  0xa2   :  { %2044 = vmatpush1.bf16.msk.msra.mxu1 %vm3091_vm11, %v2138_v5  ;;  %vm3102_vm11 = vnez %v3068_v12 }
  0xa3   :  { %1623 = vmatprep.subr.bf16.mxu1 %v2138_v5  ;;  %2014 = vmatpush1.bf16.msk.msra.mxu0 %vm3092_vm0, %v2138_v5  ;;  %vm3103_vm0 = vnez %v3070_v14 }
  0xa4   :  { %1502 = vmatprep.subr.bf16.mxu0 %v2138_v5 }
  0xa6   :  { %2046 = vmatpush1.bf16.msk.msra.mxu1 %vm2403_vm1, %v2138_v5  ;;  %vm3097_vm1 = vnez %v3058_v37 }
  0xa7   :  { %1625 = vmatprep.subr.bf16.mxu1 %v2138_v5  ;;  %2016 = vmatpush1.bf16.msk.msra.mxu0 %vm3093_vm10, %v2138_v5  ;;  %vm3104_vm10 = vnez %v3072_v36 }
  0xa8   :  { %2018 = vmatprep.subr.msk.bf16.mxu0 %vm3094_vm9, %v2138_v5  ;;  %vm3105_vm9 = vnez %v3074_v42 }
  0xaa   :  { %2048 = vmatpush1.bf16.msk.msra.mxu1 %vm3095_vm4, %v2138_v5  ;;  %vm1749_vm4 = vcmp.gt.f32.partialorder %v2652_v49, 0.5 }
  0xab   :  { %2050 = vmatprep.subr.msk.bf16.mxu1 %vm3096_vm5, %v2138_v5  ;;  %1505 = vmatpush1.bf16.msra.mxu0 %v2139_v6  ;;  %vm1750_vm5 = vcmp.gt.f32.partialorder %v2893_v34, 0.5 }
  0xac   :  { %2020 = vmatprep.subr.msk.bf16.mxu0 %vm3097_vm1, %v2138_v5  ;;  %vm1751_vm1 = vcmp.gt.f32.partialorder %v2746_v45, 0.5 }
  0xae   :  { %1628 = vmatpush1.bf16.msra.mxu1 %v2139_v6 }
  0xaf   :  { %2052 = vmatprep.subr.msk.bf16.mxu1 %vm3098_vm8, %v2138_v5  ;;  %1507 = vmatpush1.bf16.msra.mxu0 %v2139_v6  ;;  %v1313_v52 = vpop.permute.xlu0 %1312  ;;  %vm1123_vm8 = vcmask 0  }
  0xb0   :  { %2022 = vmatprep.subr.msk.bf16.mxu0 %vm3099_vm13, %v2138_v5  ;;  %vm3108_vm13 = vcmask 7168  }
  0xb2   :  { %1630 = vmatpush1.bf16.msra.mxu1 %v2139_v6 }
  0xb3   :  { %2054 = vmatprep.subr.msk.bf16.mxu1 %vm3100_vm14, %v2138_v5  ;;  %1509 = vmatpush1.bf16.msra.mxu0 %v2139_v6  ;;  %v2909_v18 = vpop.permute.xlu0 %1701  ;;  %vm1816_vm14 = vcmp.gt.f32.partialorder %v2551_v27, 0.5 }
  0xb4   :  { %2024 = vmatprep.subr.msk.bf16.mxu0 %vm3101_vm15, %v2138_v5  ;;  %v1712_v33 = vadd.f32 %v2909_v18, %v1691_v0  ;;  %v1713_v48 = vadd.f32 %v2909_v18, %v1692_v19  ;;  %vm3109_vm15 = vmmov %vm3108_vm13 }
  0xb6   :  { %1632 = vmatpush1.bf16.msra.mxu1 %v2139_v6 }
  0xb7   :  { %2056 = vmatprep.subr.msk.bf16.mxu1 %vm3102_vm11, %v2138_v5  ;;  %1511 = vmatpush1.bf16.msra.mxu0 %v2139_v6  ;;  %vm3110_vm11 = vmmov %vm3108_vm13 }
  0xb8   :  { %2026 = vmatprep.subr.msk.bf16.mxu0 %vm3103_vm0, %v2138_v5 }
  0xba   :  { %1634 = vmatpush1.bf16.msra.mxu1 %v2139_v6 }
  0xbb   :  { %2058 = vmatprep.subr.msk.bf16.mxu1 %vm3104_vm10, %v2138_v5  ;;  %1513 = vmatpush1.bf16.msra.mxu0 %v2139_v6  ;;  %vm3111_vm10 = vmmov %vm3110_vm11 }
  0xbc   :  { %2028 = vmatprep.subr.msk.bf16.mxu0 %vm3105_vm9, %v2138_v5 }
  0xbe   :  { %1636 = vmatpush1.bf16.msra.mxu1 %v2139_v6 }
  0xbf   :  { %2060 = vmatprep.subr.msk.bf16.mxu1 %vm2596_vm3, %v2138_v5  ;;  %1515 = vmatpush1.bf16.msra.mxu0 %v2139_v6  ;;  %vm1744_vm3 = vcmp.gt.f32.partialorder %v2632_v22, 0.5 }
  0xc0   :  { %2030 = vmatprep.subr.msk.bf16.mxu0 %vm2600_vm2, %v2138_v5  ;;  %vm1745_vm2 = vcmp.gt.f32.partialorder %v2443_v32, 0.5 }
  0xc2   :  { %1638 = vmatpush1.bf16.msra.mxu1 %v2139_v6 }
  0xc3   :  { %2062 = vmatprep.subr.msk.bf16.mxu1 %vm2621_vm7, %v2138_v5  ;;  %1517 = vmatpush1.bf16.msra.mxu0 %v2139_v6  ;;  %vm1746_vm7 = vcmp.gt.f32.partialorder %v2207_v17, 0.5 }
  0xc4   :  { %2032 = vmatprep.subr.msk.bf16.mxu0 %vm2625_vm12, %v2138_v5  ;;  %vm1747_vm12 = vcmp.gt.f32.partialorder %v2205_v16, 0.5 }
  0xc6   :  { %1640 = vmatpush1.bf16.msra.mxu1 %v2139_v6 }
  0xc7   :  { %2064 = vmatprep.subr.msk.bf16.mxu1 %vm2643_vm6, %v2138_v5  ;;  %1519 = vmatpush1.bf16.msra.mxu0 %v2139_v6  ;;  %vm1748_vm6 = vcmp.gt.f32.partialorder %v2743_v29, 0.5 }
  0xc8   :  { %1529 = vmatprep.subr.bf16.mxu0 %v2139_v6 }
  0xca   :  { %1642 = vmatpush1.bf16.msra.mxu1 %v2139_v6  ;;  %1521 = vmatmul.mubr.bf16.vlgmr.msra.gmra.mrb[8].mxu0 %v2753_v60 }
  0xcb   :  { %1530 = vmatpush1.bf16.msra.mxu0 %v2139_v6  ;;  %1561 = vmatprep.mubr.bf16.mxu0 %v2759_v1 }
  0xcd   :  { %1644 = vmatmul.mubr.bf16.vlgmr.msra.gmra.mrb[8].mxu1 %v1307_v35 }
  0xd6   :  { %1562 = vmatmul.mubr.bf16.vlgmr.msra.gmra.mrb[8].mxu0 %v1307_v35 }
  0xe0   :  { %v1390_v40 = vpop.f32.mrb[0].mxu1 }
  0xe1   :  { %v1392_v41 = vpop.f32.mrb[1].mxu1 }
  0xe2   :  { %v1394_v5 = vpop.f32.mrb[2].mxu1 }
  0xe3   :  { %v1395_v47 = vpop.f32.mrb[3].mxu1  ;;  %v1158_v5 = vshra.s32 %v1134_v63, 1 }
 0x11d   :  { %v1349_v6 = vpop.f32.mrb[0].mxu0 }
 0x11e   :  { %v1350_v24 = vadd.f32 %v1349_v6, %v1313_v52  ;;  %v1351_v31 = vpop.f32.mrb[1].mxu0 }
 0x11f   :  { %v1352_v37 = vadd.f32 %v1351_v31, %v1313_v52  ;;  %v1353_v44 = vpop.f32.mrb[2].mxu0  ;;  %v1686_v31 = vadd.s32 1, %v2388_v13 }
 0x120   :  { %v1391_v56 = vadd.f32 %v1390_v40, %v1350_v24  ;;  %v1354_v58 = vpop.f32.mrb[3].mxu0  ;;  %v1472_v12 = vpop.f32.mrb[4].mxu1  ;;  %v1157_v40 = vshra.s32 %v1133_v38, 1 }
 0x121   :  { %v1393_v14 = vadd.f32 %v1392_v41, %v1352_v37  ;;  %v1474_v36 = vpop.f32.mrb[5].mxu1  ;;  %v1694_v26 = vcvt.s32.f32 %v1686_v31  ;;  %v1687_v31 = vadd.s32 1, %v1676_v3 }
 0x122   :  { %v1476_v42 = vpop.f32.mrb[6].mxu1  ;;  %v1720_v61 = vsub.f32 %v1712_v33, %v1391_v56  ;;  %v1704_v28 = vsub.f32 %v2909_v18, %v1391_v56 }
 0x123   :  { %v1477_v55 = vpop.f32.mrb[7].mxu1  ;;  %v1721_v59 = vsub.f32 %v1713_v48, %v1393_v14  ;;  %v1705_v35 = vsub.f32 %v2909_v18, %v1393_v14  ;;  %v1715_v14 = vadd.f32 %v2909_v18, %v1694_v26  ;;  %v1695_v26 = vcvt.s32.f32 %v1687_v31 }
 0x124   :  { %v1928_v9 = vadd.f32 -1.0, %v1720_v61  ;;  %v1752_v46 = vsel %vm1744_vm3, %v1720_v61, %v1704_v28 }
 0x125   :  { %v1929_v15 = vadd.f32 -1.0, %v1721_v59  ;;  %v1753_v54 = vsel %vm1745_vm2, %v1721_v59, %v1705_v35 }
 0x126   :  { %v1736_v30 = vadd.f32 %v1928_v9, %v2632_v22  ;;  %v1685_v22 = vadd.s32 1, %v2215_v20 }
 0x127   :  { %v1737_v43 = vadd.f32 %v1929_v15, %v2443_v32 }
 0x128   :  { %v1760_v50 = vmul.f32 %v1736_v30, %v1720_v61  ;;  %v1693_v32 = vcvt.s32.f32 %v1685_v22  ;;  %v1679_v22 = vadd.s32 896, %v2192_v10 }
 0x129   :  { %v1761_v60 = vmul.f32 %v1737_v43, %v1721_v59 }
 0x12a   :  { %v1768_v2 = vmax.f32 %v1760_v50, 1.0  ;;  %v1714_v37 = vadd.f32 %v2909_v18, %v1693_v32 }
 0x12b   :  { %v1769_v1 = vmax.f32 %v1761_v60, 1.0  ;;  %v1160_v60 = vshra.s32 %v1136_v7, 1  ;;  %v1677_v7 = vadd.s32 640, %v2192_v10 }
 0x12c   :  { %2094 = vrcp.f32 %v1768_v2 }
 0x12d   :  { %2096 = vrcp.f32 %v1769_v1 }
 0x136   :  { %v2095_v41 = vpop.eup %2094 }
 0x137   :  { %v2097_v47 = vpop.eup %2096  ;;  %v1777_v62 = vmul.f32 %v2095_v41, %v1752_v46 }
 0x138   :  { %v1779_v0 = vmul.f32 %v2097_v47, %v1753_v54 }
 0x139   :  { %v1793_v19 = vmul.f32 %v1777_v62, %v1157_v40 }
 0x13a   :  { %v1794_v6 = vmul.f32 %v1779_v0, %v1158_v5 }
 0x13c   :  { %v1801_v24 = vadd.f32 %v1794_v6, %v1793_v19  ;;  %v1678_v6 = vadd.s32 768, %v2192_v10 }
 0x13e   :  { %v1689_v32 = vadd.s32 1, %v1678_v6 }
 0x15d   :  { %v1431_v33 = vpop.f32.mrb[4].mxu0 }
 0x15e   :  { %v1432_v38 = vadd.f32 %v1431_v33, %v1313_v52  ;;  %v1433_v57 = vpop.f32.mrb[5].mxu0  ;;  %v1690_v33 = vadd.s32 1, %v1679_v22 }
 0x15f   :  { %v1434_v63 = vadd.f32 %v1433_v57, %v1313_v52  ;;  %v1435_v44 = vpop.f32.mrb[6].mxu0 }
 0x160   :  { %v1473_v48 = vadd.f32 %v1472_v12, %v1432_v38  ;;  %v1436_v56 = vpop.f32.mrb[7].mxu0  ;;  %v1698_v57 = vcvt.s32.f32 %v1690_v33 }
 0x161   :  { %v1475_v58 = vadd.f32 %v1474_v36, %v1434_v63  ;;  %v1159_v36 = vshra.s32 %v1135_v8, 1  ;;  %v1716_v63 = vadd.f32 %v2909_v18, %v1695_v26 }
 0x162   :  { %v1722_v42 = vsub.f32 %v1714_v37, %v1473_v48  ;;  %v1706_v52 = vsub.f32 %v2909_v18, %v1473_v48  ;;  %v1697_v37 = vcvt.s32.f32 %v1689_v32  ;;  %v1719_v10 = vadd.f32 %v2909_v18, %v1698_v57 }
 0x163   :  { %v1723_v61 = vsub.f32 %v1715_v14, %v1475_v58  ;;  %1485 = vperm.xlu1 %2093, %v1475_v58   ;;  %v1707_v12 = vsub.f32 %v2909_v18, %v1475_v58  ;;  %v3107_v57 = vmov 0.0  }
 0x164   :  { %v1930_v20 = vadd.f32 -1.0, %v1722_v42  ;;  %v1754_v2 = vsel %vm1746_vm7, %v1722_v42, %v1706_v52  ;;  %1124 = vst.msk [vmem:[#allocation8] sm:$0x1] %vm1123_vm8, %v3107_v57 }
 0x165   :  { %v1931_v55 = vadd.f32 -1.0, %v1723_v61  ;;  %v1755_v35 = vsel %vm1747_vm12, %v1723_v61, %v1707_v12 }
 0x166   :  { %v1738_v13 = vadd.f32 %v1930_v20, %v2207_v17 }
 0x167   :  { %v1739_v59 = vadd.f32 %v1931_v55, %v2205_v16 }
 0x168   :  { %v1762_v9 = vmul.f32 %v1738_v13, %v1722_v42 }
 0x169   :  { %v1763_v15 = vmul.f32 %v1739_v59, %v1723_v61  ;;  %v1718_v61 = vadd.f32 %v2909_v18, %v1697_v37 }
 0x16a   :  { %v1770_v30 = vmax.f32 %v1762_v9, 1.0 }
 0x16b   :  { %v1771_v43 = vmax.f32 %v1763_v15, 1.0 }
 0x16c   :  { %2098 = vrcp.f32 %v1770_v30 }
 0x16d   :  { %2100 = vrcp.f32 %v1771_v43 }
 0x176   :  { %v2099_v50 = vpop.eup %2098 }
 0x177   :  { %v2101_v1 = vpop.eup %2100  ;;  %v1781_v28 = vmul.f32 %v2099_v50, %v1754_v2 }
 0x178   :  { %v1783_v40 = vmul.f32 %v2101_v1, %v1755_v35 }
 0x179   :  { %v1795_v41 = vmul.f32 %v1781_v28, %v1159_v36 }
 0x17a   :  { %v1796_v5 = vmul.f32 %v1783_v40, %v1160_v60 }
 0x17b   :  { %v1802_v46 = vadd.f32 %v1801_v24, %v1795_v41  ;;  %v1688_v24 = vadd.s32 1, %v1677_v7 }
 0x17d   :  { %v2937_v17 = vadd.f32 %v1802_v46, %v1796_v5  ;;  %v1696_v38 = vcvt.s32.f32 %v1688_v24 }
 0x17f   :  { %v1717_v42 = vadd.f32 %v2909_v18, %v1696_v38 }
 0x1a0   :  { %v1645_v47 = vpop.f32.mrb[8].mxu1 }
 0x1a1   :  { %v1647_v54 = vpop.f32.mrb[9].mxu1 }
 0x1a2   :  { %v1649_v16 = vpop.f32.mrb[10].mxu1 }
 0x1a3   :  { %v1650_v62 = vpop.f32.mrb[11].mxu1  ;;  %v1161_v16 = vshra.s32 %v1137_v51, 1 }
 0x1a9   :  { %v1563_v4 = vpop.f32.mrb[8].mxu0 }
 0x1aa   :  { %v1565_v8 = vpop.f32.mrb[9].mxu0 }
 0x1ab   :  { %v1567_v0 = vpop.f32.mrb[10].mxu0 }
 0x1ac   :  { %v1568_v19 = vpop.f32.mrb[11].mxu0 }
 0x1ad   :  { %v1162_v19 = vshra.s32 %v1138_v11, 1 }
 0x1e2   :  { %v1486_v44 = vpop.permute.xlu1 %1485 }
 0x1e3   :  { %v2073_v48 = vadd.f32 %v1563_v4, %v1486_v44  ;;  %v2074_v56 = vadd.f32 %v1565_v8, %v1486_v44  ;;  %v2075_v58 = vadd.f32 %v1645_v47, %v1486_v44  ;;  %v2076_v14 = vadd.f32 %v1647_v54, %v1486_v44 }
 0x1e5   :  { %v1724_v20 = vsub.f32 %v1716_v63, %v2073_v48  ;;  %1657 = vrot.lane.b32.xlu0 %v2076_v14, %s2143_s0  ;;  %v1725_v55 = vsub.f32 %v1717_v42, %v2074_v56  ;;  %v1726_v13 = vsub.f32 %v1718_v61, %v2075_v58  ;;  %v1727_v59 = vsub.f32 %v1719_v10, %v2076_v14 }
 0x1e6   :  { %v1708_v46 = vsub.f32 %v2909_v18, %v2073_v48  ;;  %v1709_v47 = vsub.f32 %v2909_v18, %v2074_v56  ;;  %v1710_v54 = vsub.f32 %v2909_v18, %v2075_v58  ;;  %v1711_v8 = vsub.f32 %v2909_v18, %v2076_v14  ;;  %v1792_v56 = vld [vmem:[#allocation5] sm:$0xff]  ;;  %v1840_v14 = vld [vmem:[#allocation7] sm:$0x1] }
 0x1e7   :  { %v1932_v9 = vadd.f32 -1.0, %v1724_v20  ;;  %v1933_v15 = vadd.f32 -1.0, %v1725_v55  ;;  %v1934_v30 = vadd.f32 -1.0, %v1726_v13  ;;  %v1935_v43 = vadd.f32 -1.0, %v1727_v59 }
 0x1e8   :  { %v1756_v4 = vsel %vm1748_vm6, %v1724_v20, %v1708_v46  ;;  %v1758_v6 = vsel %vm1750_vm5, %v1726_v13, %v1710_v54  ;;  %v1759_v31 = vsel %vm1751_vm1, %v1727_v59, %v1711_v8  ;;  %v3106_v18 = vsub.s32 0, %v2726_v39 }
 0x1e9   :  { %v1740_v52 = vadd.f32 %v1932_v9, %v2743_v29  ;;  %v1741_v12 = vadd.f32 %v1933_v15, %v2652_v49  ;;  %v1742_v36 = vadd.f32 %v1934_v30, %v2893_v34  ;;  %v1743_v50 = vadd.f32 %v1935_v43, %v2746_v45 }
 0x1ea   :  { %v1757_v29 = vsel %vm1749_vm4, %v1725_v55, %v1709_v47  ;;  %v1164_v24 = vshra.s32 %v3106_v18, 1  ;;  %v1936_v39 = vsel %vm1816_vm14, 1.0, %v3107_v57  ;;  %vm1841_vm0 = vcmp.gt.f32.partialorder %v1840_v14, 0.0 }
 0x1eb   :  { %v1764_v60 = vmul.f32 %v1740_v52, %v1724_v20  ;;  %v1765_v2 = vmul.f32 %v1741_v12, %v1725_v55  ;;  %v1766_v1 = vmul.f32 %v1742_v36, %v1726_v13  ;;  %v1767_v28 = vmul.f32 %v1743_v50, %v1727_v59  ;;  %v1842_v52 = vld [vmem:[#allocation6] sm:$0x1] }
 0x1ec   :  { %v1819_v25 = vsel %vm3109_vm15, %v1936_v39, 0.0  ;;  %v1843_v20 = vsel %vm1841_vm0, %v1840_v14, 1.0 }
 0x1ed   :  { %v1772_v35 = vmax.f32 %v1764_v60, 1.0  ;;  %v1773_v40 = vmax.f32 %v1765_v2, 1.0  ;;  %v1774_v41 = vmax.f32 %v1766_v1, 1.0  ;;  %v1775_v5 = vmax.f32 %v1767_v28, 1.0 }
 0x1ef   :  { %2102 = vrcp.f32 %v1772_v35 }
 0x1f0   :  { %2104 = vrcp.f32 %v1773_v40 }
 0x1f1   :  { %2106 = vrcp.f32 %v1774_v41 }
 0x1f2   :  { %2108 = vrcp.f32 %v1775_v5 }
 0x1f3   :  { %2110 = vrcp.f32 %v1843_v20 }
 0x1f9   :  { %v2103_v62 = vpop.eup %2102 }
 0x1fa   :  { %v2105_v0 = vpop.eup %2104  ;;  %v1785_v3 = vmul.f32 %v2103_v62, %v1756_v4 }
 0x1fb   :  { %v2107_v7 = vpop.eup %2106  ;;  %v1787_v49 = vmul.f32 %v2105_v0, %v1757_v29 }
 0x1fc   :  { %v2109_v22 = vpop.eup %2108  ;;  %v1789_v51 = vmul.f32 %v2107_v7, %v1758_v6  ;;  %v1797_v34 = vmul.f32 %v1785_v3, %v1161_v16 }
 0x1fd   :  { %v1791_v32 = vmul.f32 %v2109_v22, %v1759_v31  ;;  %v1798_v53 = vmul.f32 %v1787_v49, %v1162_v19  ;;  %v2111_v43 = vpop.eup %2110 }
 0x1fe   :  { %v1804_v11 = vadd.f32 %v2937_v17, %v1797_v34  ;;  %v1799_v45 = vmul.f32 %v1789_v51, %v1163_v23  ;;  %v1820_v17 = vrot.slane %v1819_v25, 4  ;;  %v1845_v50 = vmul.f32 %v2111_v43, %v1842_v52 }
 0x1ff   :  { %v1800_v26 = vmul.f32 %v1791_v32, %v1164_v24 }
 0x200   :  { %v1805_v33 = vadd.f32 %v1804_v11, %v1798_v53  ;;  %v1821_v63 = vadd.f32 %v1820_v17, %v1819_v25  ;;  %v1846_v28 = vsel %vm1841_vm0, %v1845_v50, 0.0 }
 0x202   :  { %v1806_v38 = vadd.f32 %v1805_v33, %v1799_v45  ;;  %v1822_v44 = vrot.slane %v1821_v63, 2 }
 0x204   :  { %v1807_v37 = vadd.f32 %v1806_v38, %v1800_v26  ;;  %v1823_v48 = vadd.f32 %v1822_v44, %v1821_v63 }
 0x206   :  { %1808 = vadd.xlane.f32.xlu1 %v1807_v37  ;;  %v1824_v61 = vrot.slane %v1823_v48, 1 }
 0x208   :  { %v1825_v10 = vadd.f32 %v1824_v61, %v1823_v48 }
 0x20a   :  { %v1836_v27 = vmax.f32 %v1825_v10, 1.0  ;;  %vm1835_vm9 = vcmp.gt.f32.partialorder %v1825_v10, 0.5 }
 0x20c   :  { %2112 = vrcp.f32 %v1836_v27 }
 0x216   :  { %v2113_v60 = vpop.eup %2112 }
 0x257   :  { %v1658_v21 = vpop.permute.xlu0 %1657 }
 0x258   :  { %1661 = vst.msk [vmem:[#allocation4] sm:$0xff] %vm3108_vm13, %v1658_v21 }
 0x293   :  { %v1809_v58 = vpop.xlane.xlu1 %1808 }
 0x294   :  { %v1810_v42 = vadd.f32 %v1809_v58, %v1792_v56 }
 0x296   :  { %1811 = vst.msk [vmem:[#allocation5] sm:$0xff] %vm3110_vm11, %v1810_v42 }
 0x29d   :  { %v1826_v55 = vld [vmem:[#allocation5] sm:$0xff] }
 0x29e   :  { %v1827_v13 = vmul.f32 %v1936_v39, %v1826_v55 }
 0x2a0   :  { %v1828_v59 = vsel %vm3111_vm10, %v1827_v13, 0.0 }
 0x2a1   :  { %v1829_v9 = vrot.slane %v1828_v59, 4 }
 0x2a3   :  { %v1830_v15 = vadd.f32 %v1829_v9, %v1828_v59 }
 0x2a5   :  { %v1831_v30 = vrot.slane %v1830_v15, 2 }
 0x2a7   :  { %v1832_v12 = vadd.f32 %v1831_v30, %v1830_v15 }
 0x2a9   :  { %v1833_v36 = vrot.slane %v1832_v12, 1 }
 0x2ab   :  { %v1834_v2 = vadd.f32 %v1833_v36, %v1832_v12 }
 0x2ad   :  { %v1838_v1 = vmul.f32 %v2113_v60, %v1834_v2 }
 0x2af   :  { %v1839_v35 = vsel %vm1835_vm9, %v1838_v1, 0.0 }
 0x2b0   :  { %v1847_v40 = vadd.f32 %v1846_v28, %v1839_v35 }
 0x2b2   :  { %1849 = vst.msk [vmem:[#allocation8] sm:$0x1] %vm1123_vm8, %v1847_v40 }
 0x2b3   :  { %2125 = shalt.err (!%p2122_p4)
}
 0x2b4   :  { %s2126_s14 = scalar_lea.hbm %s2994_s4, 16 }
 0x2b5   :  { %p2127_p5 = scmp.ne.s32.totalorder %s2994_s4, %s2126_s14  ;;  %p2130_p6 = scmp.lt.u32.totalorder %s2126_s14, %s2994_s4 }
 0x2b7   :  { %p2132_p7 = pnand %p2130_p6, %p2127_p5 }
 0x2b9   :  { %2135 = shalt.err (!%p2132_p7)
}
 0x2ba   :  { %1859 = dma.vmem_to_hbm [thread:$0]  %s1857_s9, 16, %s2994_s4, [#allocation9]  }
 0x2bb   :  { %2136 = dma.done.wait [#allocation9], 16  }
 0x2bc   :  { %2137 = vsyncadd [#allocation9], 4294967280 }
 0x2bd   :  { %1863 = vsyncpa [#allocation9], 1 }

</bundles_post_ra>
